<compile_context>
chip_gen: v6e
topology: v6e:2x2x1
jax: 0.10.0
libtpu: 0.0.40
codegen_flags: <defaults>
</compile_context>

<pallas_src>
import functools

import jax
import jax.numpy as jnp
from jax.experimental import pallas as pl
from jax.experimental.pallas import tpu as pltpu

OUT_PAD = 128  # fc3's 7 outputs padded to a full 128-lane row


# ---------------------------------------------------------------------------
# Fused kernel: point MLP -> max-pool -> FC head, for one group of Bt batches.
# ---------------------------------------------------------------------------
def _rigid_tnet_kernel(x_ref, w1_ref, b1_ref, w2_ref, b2_ref, w3_ref, b3_ref,
                       w4_ref, b4_ref, w5_ref, b5_ref, w6_ref, b6_ref,
                       out_ref):
    bt, n, c = x_ref.shape
    x = x_ref[...].reshape(bt * n, c)                     # bf16 (Bt*N, C)

    def mm(a, w_ref, b_ref):
        # bf16 x bf16 matmul, f32 accumulate, f32 bias.
        return jnp.dot(a, w_ref[...],
                       preferred_element_type=jnp.float32) + b_ref[...]

    # Shared per-point MLP (conv1/2/3 + folded BN + ReLU).
    h = jnp.maximum(mm(x, w1_ref, b1_ref), 0.0).astype(jnp.bfloat16)   # (Bt*N, 64)
    h = jnp.maximum(mm(h, w2_ref, b2_ref), 0.0).astype(jnp.bfloat16)   # (Bt*N, 128)
    h = jnp.maximum(mm(h, w3_ref, b3_ref), 0.0)                        # (Bt*N, 1024) f32

    # torch.max(x, 2): global max-pool over the points axis (sublane reduce).
    feat = jnp.max(h.reshape(bt, n, h.shape[-1]), axis=1)              # (Bt, 1024)
    feat = feat.astype(jnp.bfloat16)

    # FC head (fc1/fc2 + folded BN + ReLU, fc3 padded to 128 lanes).
    y = jnp.maximum(mm(feat, w4_ref, b4_ref), 0.0).astype(jnp.bfloat16)  # (Bt, 512)
    y = jnp.maximum(mm(y, w5_ref, b5_ref), 0.0).astype(jnp.bfloat16)     # (Bt, 256)
    out_ref[...] = mm(y, w6_ref, b6_ref)[None]                           # (1, Bt, 128)


def _choose_bt(batch, n_points, target_rows=128):
    """Batches per grid step: fill MXU rows, keep >=2 parallel steps (v7x)."""
    bt = max(1, min(batch, target_rows // max(n_points, 1)))
    if bt > 1 and batch // bt < 2:
        bt = max(1, batch // 2)            # leave work for the second TensorCore
    while batch % bt:
        bt -= 1
    return bt


# ---------------------------------------------------------------------------
# Plain-JAX glue: quaternion -> rotation matrix, 4x4 transform assembly.
# ---------------------------------------------------------------------------
def quaternion_to_matrix(q):
    """pytorch3d convention: q = (w, x, y, z), real part first."""
    r, i, j, k = q[:, 0], q[:, 1], q[:, 2], q[:, 3]
    two_s = 2.0 / jnp.sum(q * q, axis=-1)
    o = jnp.stack(
        (
            1 - two_s * (j * j + k * k),
            two_s * (i * j - k * r),
            two_s * (i * k + j * r),
            two_s * (i * j + k * r),
            1 - two_s * (i * i + k * k),
            two_s * (j * k - i * r),
            two_s * (i * k - j * r),
            two_s * (j * k + i * r),
            1 - two_s * (i * i + j * j),
        ),
        axis=-1,
    )
    return o.reshape(q.shape[0], 3, 3)


def rigid_tnet_forward(x_bcn, params):
    """x_bcn: (B, C, N) float32, same axis convention as the PyTorch module."""
    B, C, N = x_bcn.shape
    bt = _choose_bt(B, N)
    grid = B // bt

    # Points-major, bf16 matmul inputs (tiny transpose+cast fused by XLA).
    x_nc = jnp.transpose(x_bcn, (0, 2, 1)).astype(jnp.bfloat16)      # (B, N, C)

    const2 = lambda g: (0, 0)
    out_pad = pl.pallas_call(
        _rigid_tnet_kernel,
        out_shape=jax.ShapeDtypeStruct((grid, bt, OUT_PAD), jnp.float32),
        grid=(grid,),
        in_specs=[
            pl.BlockSpec((bt, N, C), lambda g: (g, 0, 0)),
            pl.BlockSpec((C, 64), const2), pl.BlockSpec((1, 64), const2),
            pl.BlockSpec((64, 128), const2), pl.BlockSpec((1, 128), const2),
            pl.BlockSpec((128, 1024), const2), pl.BlockSpec((1, 1024), const2),
            pl.BlockSpec((1024, 512), const2), pl.BlockSpec((1, 512), const2),
            pl.BlockSpec((512, 256), const2), pl.BlockSpec((1, 256), const2),
            pl.BlockSpec((256, OUT_PAD), const2), pl.BlockSpec((1, OUT_PAD), const2),
        ],
        out_specs=pl.BlockSpec((1, bt, OUT_PAD), lambda g: (g, 0, 0)),
        compiler_params=pltpu.CompilerParams(
            dimension_semantics=("parallel",),
            vmem_limit_bytes=32 * 1024 * 1024,
        ),
    )(x_nc, params["w1"], params["b1"], params["w2"], params["b2"],
      params["w3"], params["b3"], params["w4"], params["b4"],
      params["w5"], params["b5"], params["w6"], params["b6"])

    out7 = out_pad.reshape(B, OUT_PAD)[:, :7]                        # (B, 7) f32

    quaternions = jnp.tile(jnp.array([1.0, 0.0, 0.0, 0.0], jnp.float32), (B, 1))
    quaternions = quaternions + out7[:, :4]
    # NOTE: same zero-norm hazard as the PyTorch reference if real part -> -1.
    norms = jnp.linalg.norm(quaternions, axis=1, keepdims=True)
    normalized_quaternions = quaternions / norms
    rotation = quaternion_to_matrix(normalized_quaternions)          # (B, 3, 3)
    translation = out7[:, 4:7]                                       # (B, 3)

    transform = jnp.tile(jnp.eye(4, dtype=jnp.float32), (B, 1, 1))
    transform = transform.at[:, :3, :3].set(rotation)
    transform = transform.at[:, :3, 3].set(translation)
    return transform, rotation, translation


# ---------------------------------------------------------------------------
# Deterministic synthetic parameters (PyTorch-style U(-1/sqrt(fan_in), ...)),
# with eval-mode BatchNorm folded in.  Weights bf16, biases f32 rows.
# ---------------------------------------------------------------------------
def init_params(channel, key):
    keys = jax.random.split(key, 24)

    def lin(kw, kb, cin, cout):
        bound = 1.0 / (cin ** 0.5)
        w = jax.random.uniform(kw, (cin, cout), jnp.float32, -bound, bound)
        b = jax.random.uniform(kb, (cout,), jnp.float32, -bound, bound)
        return w, b

    def bn(kg, kb, c):
        gamma = jax.random.uniform(kg, (c,), jnp.float32, 0.8, 1.2)
        beta = jax.random.uniform(kb, (c,), jnp.float32, -0.1, 0.1)
        return gamma, beta

    def fold(w, b, gamma, beta, eps=1e-5):
        # eval-mode BN with running_mean=0, running_var=1 folded into w, b.
        scale = gamma / jnp.sqrt(1.0 + eps)
        w = (w * scale[None, :]).astype(jnp.bfloat16)
        b = (b * scale + beta)[None, :].astype(jnp.float32)
        return w, b

    w1, b1 = fold(*lin(keys[0], keys[1], channel, 64), *bn(keys[2], keys[3], 64))
    w2, b2 = fold(*lin(keys[4], keys[5], 64, 128), *bn(keys[6], keys[7], 128))
    w3, b3 = fold(*lin(keys[8], keys[9], 128, 1024), *bn(keys[10], keys[11], 1024))
    w4, b4 = fold(*lin(keys[12], keys[13], 1024, 512), *bn(keys[14], keys[15], 512))
    w5, b5 = fold(*lin(keys[16], keys[17], 512, 256), *bn(keys[18], keys[19], 256))

    w6, b6 = lin(keys[20], keys[21], 256, 7)
    # Pad fc3 to 128 output lanes so the kernel's final store is unmasked.
    w6p = jnp.zeros((256, OUT_PAD), jnp.float32).at[:, :7].set(w6).astype(jnp.bfloat16)
    b6p = jnp.zeros((1, OUT_PAD), jnp.float32).at[0, :7].set(b6)

    return dict(w1=w1, b1=b1, w2=w2, b2=b2, w3=w3, b3=b3,
                w4=w4, b4=b4, w5=w5, b5=b5, w6=w6p, b6=b6p)


if __name__ == "__main__":
    key = jax.random.PRNGKey(0)
    B, C, N = 2, 3, 64                                   # (batch, xyz channel, points)
    x = jax.random.normal(jax.random.fold_in(key, 1), (B, C, N), jnp.float32)
    params = init_params(C, jax.random.fold_in(key, 2))

    fwd = jax.jit(functools.partial(rigid_tnet_forward, params=params))
    transform, rotation, translation = fwd(x)
    jax.block_until_ready((transform, rotation, translation))

    assert transform.shape == (B, 4, 4)
    assert rotation.shape == (B, 3, 3)
    assert translation.shape == (B, 3)
    print("KERNEL_OK")
</pallas_src>

<mosaic_0001>
module attributes {stable_mosaic.version = 11 : i64} {
  func.func @_rigid_tnet_kernel(%arg0: i32, %arg1: memref<1x64x3xbf16, #tpu.memory_space<vmem>>, %arg2: memref<3x64xbf16, #tpu.memory_space<vmem>>, %arg3: memref<1x64xf32, #tpu.memory_space<vmem>>, %arg4: memref<64x128xbf16, #tpu.memory_space<vmem>>, %arg5: memref<1x128xf32, #tpu.memory_space<vmem>>, %arg6: memref<128x1024xbf16, #tpu.memory_space<vmem>>, %arg7: memref<1x1024xf32, #tpu.memory_space<vmem>>, %arg8: memref<1024x512xbf16, #tpu.memory_space<vmem>>, %arg9: memref<1x512xf32, #tpu.memory_space<vmem>>, %arg10: memref<512x256xbf16, #tpu.memory_space<vmem>>, %arg11: memref<1x256xf32, #tpu.memory_space<vmem>>, %arg12: memref<256x128xbf16, #tpu.memory_space<vmem>>, %arg13: memref<1x128xf32, #tpu.memory_space<vmem>>, %arg14: memref<1x1x128xf32, #tpu.memory_space<vmem>>) attributes {dimension_semantics = [#tpu.dimension_semantics<parallel>], iteration_bounds = array<i64: 2>, scalar_prefetch = 0 : i64, scratch_operands = 0 : i64, tpu.core_type = #tpu.core_type<tc>, window_params = [{transform_indices = @transform_0, window_bounds = array<i64: 1, 64, 3>}, {pipeline_mode = #tpu.pipeline_mode<synchronous>, transform_indices = @transform_1, window_bounds = array<i64: 3, 64>}, {pipeline_mode = #tpu.pipeline_mode<synchronous>, transform_indices = @transform_2, window_bounds = array<i64: 1, 64>}, {pipeline_mode = #tpu.pipeline_mode<synchronous>, transform_indices = @transform_3, window_bounds = array<i64: 64, 128>}, {pipeline_mode = #tpu.pipeline_mode<synchronous>, transform_indices = @transform_4, window_bounds = array<i64: 1, 128>}, {pipeline_mode = #tpu.pipeline_mode<synchronous>, transform_indices = @transform_5, window_bounds = array<i64: 128, 1024>}, {pipeline_mode = #tpu.pipeline_mode<synchronous>, transform_indices = @transform_6, window_bounds = array<i64: 1, 1024>}, {pipeline_mode = #tpu.pipeline_mode<synchronous>, transform_indices = @transform_7, window_bounds = array<i64: 1024, 512>}, {pipeline_mode = #tpu.pipeline_mode<synchronous>, transform_indices = @transform_8, window_bounds = array<i64: 1, 512>}, {pipeline_mode = #tpu.pipeline_mode<synchronous>, transform_indices = @transform_9, window_bounds = array<i64: 512, 256>}, {pipeline_mode = #tpu.pipeline_mode<synchronous>, transform_indices = @transform_10, window_bounds = array<i64: 1, 256>}, {pipeline_mode = #tpu.pipeline_mode<synchronous>, transform_indices = @transform_11, window_bounds = array<i64: 256, 128>}, {pipeline_mode = #tpu.pipeline_mode<synchronous>, transform_indices = @transform_12, window_bounds = array<i64: 1, 128>}, {transform_indices = @transform_13, window_bounds = array<i64: 1, 1, 128>}]} {
    %c0 = arith.constant 0 : index
    %c0_0 = arith.constant 0 : index
    %c0_1 = arith.constant 0 : index
    %0 = vector.load %arg1[%c0, %c0_0, %c0_1] : memref<1x64x3xbf16, #tpu.memory_space<vmem>>, vector<1x64x3xbf16>
    %1 = vector.shape_cast %0 : vector<1x64x3xbf16> to vector<64x3xbf16>
    %c0_2 = arith.constant 0 : index
    %c0_3 = arith.constant 0 : index
    %2 = vector.load %arg2[%c0_2, %c0_3] : memref<3x64xbf16, #tpu.memory_space<vmem>>, vector<3x64xbf16>
    %cst = arith.constant dense<0.000000e+00> : vector<64x64xf32>
    %3 = tpu.matmul %1, %2, %cst {dimension_numbers = #tpu.dot_dimension_numbers<[1], [0], [0], [1], [0, 0, 1, 1], [], []>} : vector<64x3xbf16>, vector<3x64xbf16>, vector<64x64xf32> -> vector<64x64xf32>
    %c0_4 = arith.constant 0 : index
    %c0_5 = arith.constant 0 : index
    %4 = vector.load %arg3[%c0_4, %c0_5] : memref<1x64xf32, #tpu.memory_space<vmem>>, vector<1x64xf32>
    %5 = vector.broadcast %4 : vector<1x64xf32> to vector<64x64xf32>
    %6 = arith.addf %3, %5 : vector<64x64xf32>
    %cst_6 = arith.constant 0.000000e+00 : f32
    %7 = vector.broadcast %cst_6 : f32 to vector<64x64xf32>
    %8 = arith.maximumf %6, %7 : vector<64x64xf32>
    %9 = arith.truncf %8 : vector<64x64xf32> to vector<64x64xbf16>
    %c0_7 = arith.constant 0 : index
    %c0_8 = arith.constant 0 : index
    %10 = vector.load %arg4[%c0_7, %c0_8] : memref<64x128xbf16, #tpu.memory_space<vmem>>, vector<64x128xbf16>
    %cst_9 = arith.constant dense<0.000000e+00> : vector<64x128xf32>
    %11 = tpu.matmul %9, %10, %cst_9 {dimension_numbers = #tpu.dot_dimension_numbers<[1], [0], [0], [1], [0, 0, 1, 1], [], []>} : vector<64x64xbf16>, vector<64x128xbf16>, vector<64x128xf32> -> vector<64x128xf32>
    %c0_10 = arith.constant 0 : index
    %c0_11 = arith.constant 0 : index
    %12 = vector.load %arg5[%c0_10, %c0_11] : memref<1x128xf32, #tpu.memory_space<vmem>>, vector<1x128xf32>
    %13 = vector.broadcast %12 : vector<1x128xf32> to vector<64x128xf32>
    %14 = arith.addf %11, %13 : vector<64x128xf32>
    %cst_12 = arith.constant 0.000000e+00 : f32
    %15 = vector.broadcast %cst_12 : f32 to vector<64x128xf32>
    %16 = arith.maximumf %14, %15 : vector<64x128xf32>
    %17 = arith.truncf %16 : vector<64x128xf32> to vector<64x128xbf16>
    %c0_13 = arith.constant 0 : index
    %c0_14 = arith.constant 0 : index
    %18 = vector.load %arg6[%c0_13, %c0_14] : memref<128x1024xbf16, #tpu.memory_space<vmem>>, vector<128x1024xbf16>
    %cst_15 = arith.constant dense<0.000000e+00> : vector<64x1024xf32>
    %19 = tpu.matmul %17, %18, %cst_15 {dimension_numbers = #tpu.dot_dimension_numbers<[1], [0], [0], [1], [0, 0, 1, 1], [], []>} : vector<64x128xbf16>, vector<128x1024xbf16>, vector<64x1024xf32> -> vector<64x1024xf32>
    %c0_16 = arith.constant 0 : index
    %c0_17 = arith.constant 0 : index
    %20 = vector.load %arg7[%c0_16, %c0_17] : memref<1x1024xf32, #tpu.memory_space<vmem>>, vector<1x1024xf32>
    %21 = vector.broadcast %20 : vector<1x1024xf32> to vector<64x1024xf32>
    %22 = arith.addf %19, %21 : vector<64x1024xf32>
    %cst_18 = arith.constant 0.000000e+00 : f32
    %23 = vector.broadcast %cst_18 : f32 to vector<64x1024xf32>
    %24 = arith.maximumf %22, %23 : vector<64x1024xf32>
    %25 = vector.shape_cast %24 : vector<64x1024xf32> to vector<1x64x1024xf32>
    %cst_19 = arith.constant dense<0xFF800000> : vector<1x1024xf32>
    %26 = vector.multi_reduction <maximumf>, %25, %cst_19 [1] : vector<1x64x1024xf32> to vector<1x1024xf32>
    %27 = arith.truncf %26 : vector<1x1024xf32> to vector<1x1024xbf16>
    %c0_20 = arith.constant 0 : index
    %c0_21 = arith.constant 0 : index
    %28 = vector.load %arg8[%c0_20, %c0_21] : memref<1024x512xbf16, #tpu.memory_space<vmem>>, vector<1024x512xbf16>
    %cst_22 = arith.constant dense<0.000000e+00> : vector<1x512xf32>
    %29 = tpu.matmul %27, %28, %cst_22 {dimension_numbers = #tpu.dot_dimension_numbers<[1], [0], [0], [1], [0, 0, 1, 1], [], []>} : vector<1x1024xbf16>, vector<1024x512xbf16>, vector<1x512xf32> -> vector<1x512xf32>
    %c0_23 = arith.constant 0 : index
    %c0_24 = arith.constant 0 : index
    %30 = vector.load %arg9[%c0_23, %c0_24] : memref<1x512xf32, #tpu.memory_space<vmem>>, vector<1x512xf32>
    %31 = arith.addf %29, %30 : vector<1x512xf32>
    %cst_25 = arith.constant 0.000000e+00 : f32
    %32 = vector.broadcast %cst_25 : f32 to vector<1x512xf32>
    %33 = arith.maximumf %31, %32 : vector<1x512xf32>
    %34 = arith.truncf %33 : vector<1x512xf32> to vector<1x512xbf16>
    %c0_26 = arith.constant 0 : index
    %c0_27 = arith.constant 0 : index
    %35 = vector.load %arg10[%c0_26, %c0_27] : memref<512x256xbf16, #tpu.memory_space<vmem>>, vector<512x256xbf16>
    %cst_28 = arith.constant dense<0.000000e+00> : vector<1x256xf32>
    %36 = tpu.matmul %34, %35, %cst_28 {dimension_numbers = #tpu.dot_dimension_numbers<[1], [0], [0], [1], [0, 0, 1, 1], [], []>} : vector<1x512xbf16>, vector<512x256xbf16>, vector<1x256xf32> -> vector<1x256xf32>
    %c0_29 = arith.constant 0 : index
    %c0_30 = arith.constant 0 : index
    %37 = vector.load %arg11[%c0_29, %c0_30] : memref<1x256xf32, #tpu.memory_space<vmem>>, vector<1x256xf32>
    %38 = arith.addf %36, %37 : vector<1x256xf32>
    %cst_31 = arith.constant 0.000000e+00 : f32
    %39 = vector.broadcast %cst_31 : f32 to vector<1x256xf32>
    %40 = arith.maximumf %38, %39 : vector<1x256xf32>
    %41 = arith.truncf %40 : vector<1x256xf32> to vector<1x256xbf16>
    %c0_32 = arith.constant 0 : index
    %c0_33 = arith.constant 0 : index
    %42 = vector.load %arg12[%c0_32, %c0_33] : memref<256x128xbf16, #tpu.memory_space<vmem>>, vector<256x128xbf16>
    %cst_34 = arith.constant dense<0.000000e+00> : vector<1x128xf32>
    %43 = tpu.matmul %41, %42, %cst_34 {dimension_numbers = #tpu.dot_dimension_numbers<[1], [0], [0], [1], [0, 0, 1, 1], [], []>} : vector<1x256xbf16>, vector<256x128xbf16>, vector<1x128xf32> -> vector<1x128xf32>
    %c0_35 = arith.constant 0 : index
    %c0_36 = arith.constant 0 : index
    %44 = vector.load %arg13[%c0_35, %c0_36] : memref<1x128xf32, #tpu.memory_space<vmem>>, vector<1x128xf32>
    %45 = arith.addf %43, %44 : vector<1x128xf32>
    %46 = vector.shape_cast %45 : vector<1x128xf32> to vector<1x1x128xf32>
    %c0_37 = arith.constant 0 : index
    %c0_38 = arith.constant 0 : index
    %c0_39 = arith.constant 0 : index
    %47 = vector.load %arg14[%c0_37, %c0_38, %c0_39] : memref<1x1x128xf32, #tpu.memory_space<vmem>>, vector<1x1x128xf32>
    tpu.vector_store %arg14[%c0_37, %c0_38, %c0_39], %46 {strides = array<i32>} : memref<1x1x128xf32, #tpu.memory_space<vmem>>, vector<1x1x128xf32>,
    return
  }
  func.func @transform_0(%arg0: i32) -> (i32, i32, i32) {
    %c0_i32 = arith.constant 0 : i32
    %c0_i32_0 = arith.constant 0 : i32
    %c0_i32_1 = arith.constant 0 : i32
    return %arg0, %c0_i32, %c0_i32_0 : i32, i32, i32
  }
  func.func @transform_1(%arg0: i32) -> (i32, i32) {
    %c0_i32 = arith.constant 0 : i32
    %c0_i32_0 = arith.constant 0 : i32
    %c0_i32_1 = arith.constant 0 : i32
    return %c0_i32, %c0_i32_0 : i32, i32
  }
  func.func @transform_2(%arg0: i32) -> (i32, i32) {
    %c0_i32 = arith.constant 0 : i32
    %c0_i32_0 = arith.constant 0 : i32
    %c0_i32_1 = arith.constant 0 : i32
    return %c0_i32, %c0_i32_0 : i32, i32
  }
  func.func @transform_3(%arg0: i32) -> (i32, i32) {
    %c0_i32 = arith.constant 0 : i32
    %c0_i32_0 = arith.constant 0 : i32
    %c0_i32_1 = arith.constant 0 : i32
    return %c0_i32, %c0_i32_0 : i32, i32
  }
  func.func @transform_4(%arg0: i32) -> (i32, i32) {
    %c0_i32 = arith.constant 0 : i32
    %c0_i32_0 = arith.constant 0 : i32
    %c0_i32_1 = arith.constant 0 : i32
    return %c0_i32, %c0_i32_0 : i32, i32
  }
  func.func @transform_5(%arg0: i32) -> (i32, i32) {
    %c0_i32 = arith.constant 0 : i32
    %c0_i32_0 = arith.constant 0 : i32
    %c0_i32_1 = arith.constant 0 : i32
    return %c0_i32, %c0_i32_0 : i32, i32
  }
  func.func @transform_6(%arg0: i32) -> (i32, i32) {
    %c0_i32 = arith.constant 0 : i32
    %c0_i32_0 = arith.constant 0 : i32
    %c0_i32_1 = arith.constant 0 : i32
    return %c0_i32, %c0_i32_0 : i32, i32
  }
  func.func @transform_7(%arg0: i32) -> (i32, i32) {
    %c0_i32 = arith.constant 0 : i32
    %c0_i32_0 = arith.constant 0 : i32
    %c0_i32_1 = arith.constant 0 : i32
    return %c0_i32, %c0_i32_0 : i32, i32
  }
  func.func @transform_8(%arg0: i32) -> (i32, i32) {
    %c0_i32 = arith.constant 0 : i32
    %c0_i32_0 = arith.constant 0 : i32
    %c0_i32_1 = arith.constant 0 : i32
    return %c0_i32, %c0_i32_0 : i32, i32
  }
  func.func @transform_9(%arg0: i32) -> (i32, i32) {
    %c0_i32 = arith.constant 0 : i32
    %c0_i32_0 = arith.constant 0 : i32
    %c0_i32_1 = arith.constant 0 : i32
    return %c0_i32, %c0_i32_0 : i32, i32
  }
  func.func @transform_10(%arg0: i32) -> (i32, i32) {
    %c0_i32 = arith.constant 0 : i32
    %c0_i32_0 = arith.constant 0 : i32
    %c0_i32_1 = arith.constant 0 : i32
    return %c0_i32, %c0_i32_0 : i32, i32
  }
  func.func @transform_11(%arg0: i32) -> (i32, i32) {
    %c0_i32 = arith.constant 0 : i32
    %c0_i32_0 = arith.constant 0 : i32
    %c0_i32_1 = arith.constant 0 : i32
    return %c0_i32, %c0_i32_0 : i32, i32
  }
  func.func @transform_12(%arg0: i32) -> (i32, i32) {
    %c0_i32 = arith.constant 0 : i32
    %c0_i32_0 = arith.constant 0 : i32
    %c0_i32_1 = arith.constant 0 : i32
    return %c0_i32, %c0_i32_0 : i32, i32
  }
  func.func @transform_13(%arg0: i32) -> (i32, i32, i32) {
    %c0_i32 = arith.constant 0 : i32
    %c0_i32_0 = arith.constant 0 : i32
    %c0_i32_1 = arith.constant 0 : i32
    return %arg0, %c0_i32, %c0_i32_0 : i32, i32, i32
  }
}

</mosaic_0001>

<bundles_post_ra>
// kernel: rigid_tnet_forward.1
= control target key start
LH: loop header
LB: loop body
LE: loop exit
PB: predicated region body
PF: predicated region fallthrough
CT: control target
= control target key end

     0   :  { %18 = vsyncpa [#allocation3], 0  ;;  %s5959_s0 = inlined_call_operand.vmem [shape: bf16[2,64,3], index: 0, kind: input, shape index: {}]   ;;  %s5960_s1 = inlined_call_operand.vmem [shape: bf16[3,64], index: 1, kind: input, shape index: {}]   ;;  %s5961_s2 = inlined_call_operand.vmem [shape: f32[1,64], index: 2, kind: input, shape index: {}]   ;;  %s5962_s3 = inlined_call_operand.vmem [shape: bf16[64,128], index: 3, kind: input, shape index: {}]   ;;  %s5963_s4 = inlined_call_operand.vmem [shape: f32[1,128], index: 4, kind: input, shape index: {}]   ;;  %s5964_s5 = inlined_call_operand.hbm [shape: bf16[128,1024], index: 5, kind: input, shape index: {}]   ;;  %s5965_s6 = inlined_call_operand.vmem [shape: f32[1,1024], index: 6, kind: input, shape index: {}]   ;;  %s5966_s7 = inlined_call_operand.hbm [shape: bf16[1024,512], index: 7, kind: input, shape index: {}]   ;;  %s5967_s8 = inlined_call_operand.vmem [shape: f32[1,512], index: 8, kind: input, shape index: {}]   ;;  %s5968_s9 = inlined_call_operand.hbm [shape: bf16[512,256], index: 9, kind: input, shape index: {}]   ;;  %s5969_s10 = inlined_call_operand.vmem [shape: f32[1,256], index: 10, kind: input, shape index: {}]   ;;  %s5970_s11 = inlined_call_operand.hbm [shape: bf16[256,128], index: 11, kind: input, shape index: {}]   ;;  %s5971_s12 = inlined_call_operand.vmem [shape: f32[1,128], index: 12, kind: input, shape index: {}]   ;;  %s5972_s13 = inlined_call_operand.vmem [shape: f32[2,1,128], index: 13, kind: output, shape index: {}]  }
   0x1   :  { %19 = vsyncpa [#allocation5], 0 }
   0x2   :  { %20 = vsyncpa [#allocation8], 0  ;;  %s5555_s25 = smov 0  }
   0x3 LB: > { %s5471_s26 = smov [#allocation4]   ;;  %s5561_s28 = sadd.s32 4294967295, %s5469_s25   ;;  %s5469_s25 = sphi %s5555_s25, %s26_s25  }
   0x4   : > { %s375_s27 = sshll.u32 %s5471_s26, 4  ;;  %p4289_p0 = scmp.ge.s32.totalorder %s5469_s25, 1  ;;  %s376_s27 = int_to_ptr.vmem [resolvable:$true] %s375_s27 }
   0x5   : > { %p335_p1 = scmp.lt.s32.totalorder %s5469_s25, 3  ;;  %p4813_p2 = scmp.eq.s32.totalorder %s5561_s28, 0 }
   0x6   : > { %s5472_s30 = smov [#allocation2]   ;;  %s5473_s16 = smov [#allocation6]  }
   0x7   : > { %p5566_p3 = pnand %p4289_p0, %p335_p1  ;;  %s359_s14 = sshll.u32 %s5472_s30, 4  ;;  %s5572_s14 = int_to_ptr.vmem [resolvable:$true] %s359_s14 }
   0x8   : > { %s5580_s17 = sshll.u32 %s5473_s16, 4  ;;  %s5358_s18 = scalar_lea.vmem %s376_s27, 32768  ;;  %s392_s17 = int_to_ptr.vmem [resolvable:$true] %s5580_s17 }
   0x9   : > { %p4800_p4 = pneg %p5566_p3  ;;  %p5359_p7 = scmp.ne.s32.totalorder %s376_s27, %s5358_s18 }
   0xa   : > { %p5366_p10 = scmp.lt.s32.totalorder %s376_s27, %s376_s27  ;;  %p5367_p11 = scmp.lt.s32.totalorder %s5358_s18, %s5358_s18 }
   0xb   : > { %p5576_p5 = pnand %p4813_p2, %p4800_p4 }
   0xc   : > { %p5368_p12 = por %p5367_p11, %p5366_p10 }
   0xd   : > { %p5349_p6 = pneg %p5576_p5 }
   0xf   : > { %p5361_p8 = pnand %p5359_p7, %p5349_p6 }
  0x11   : > { %p5362_p9 = pneg %p5361_p8 }
  0x13   : > { %p5369_p13 = pnand %p5368_p12, %p5362_p9 }
  0x15   : > { %5372 = shalt.err (!%p5369_p13)
}
  0x16   : > { %s5474_s19 = smov 256   ;;  %s5475_s20 = smov 16  }
  0x17   : > { %4806 = dma.hbm_to_vmem [thread:$0]  (!%p5576_p5), %s5966_s7, 32768, %s376_s27, [#allocation5], %s5474_s19, %s5474_s19, %s5475_s20  }
  0x18   : > { %s5384_s23 = scalar_lea.vmem %s5572_s14, 8192  ;;  %p5392_p7 = scmp.lt.s32.totalorder %s5572_s14, %s5572_s14 }
  0x19   : > { %p5385_p0 = scmp.ne.s32.totalorder %s5572_s14, %s5384_s23  ;;  %p5393_p8 = scmp.lt.s32.totalorder %s5384_s23, %s5384_s23 }
  0x1b   : > { %p5387_p1 = pnand %p5385_p0, %p5349_p6  ;;  %p5394_p9 = por %p5393_p8, %p5392_p7 }
  0x1d   : > { %p5388_p4 = pneg %p5387_p1 }
  0x1f   : > { %p5395_p10 = pnand %p5394_p9, %p5388_p4 }
  0x21   : > { %5398 = shalt.err (!%p5395_p10)
}
  0x22   : > { %s5476_s24 = smov 512   ;;  %s5477_s26 = smov 32  }
  0x23   : > { %4803 = dma.hbm_to_vmem [thread:$0]  (!%p5576_p5), %s5964_s5, 8192, %s5572_s14, [#allocation3], %s5476_s24, %s5476_s24, %s5477_s26  }
  0x24   : > { %s5410_s16 = scalar_lea.vmem %s392_s17, 8192  ;;  %p5418_p0 = scmp.lt.s32.totalorder %s392_s17, %s392_s17 }
  0x25   : > { %p5411_p11 = scmp.ne.s32.totalorder %s392_s17, %s5410_s16  ;;  %p5419_p1 = scmp.lt.s32.totalorder %s5410_s16, %s5410_s16 }
  0x27   : > { %p5413_p12 = pnand %p5411_p11, %p5349_p6  ;;  %p5420_p4 = por %p5419_p1, %p5418_p0 }
  0x29   : > { %p5414_p13 = pneg %p5413_p12 }
  0x2b   : > { %p5421_p7 = pnand %p5420_p4, %p5414_p13 }
  0x2d   : > { %5424 = shalt.err (!%p5421_p7)
}
  0x2e   : > { %s5478_s18 = smov 128   ;;  %s5479_s19 = smov 8  }
  0x2f   : > { %4809 = dma.hbm_to_vmem [thread:$0]  (!%p5576_p5), %s5968_s9, 8192, %s392_s17, [#allocation5], %s5478_s18, %s5478_s18, %s5479_s19  }
  0x30   : > { %s5480_s14 = smov [#allocation7]  }
  0x31   : > { %s407_s22 = sshll.u32 %s5480_s14, 4  ;;  %s408_s22 = int_to_ptr.vmem [resolvable:$true] %s407_s22 }
  0x32   : > { %s5436_s23 = scalar_lea.vmem %s408_s22, 2048  ;;  %p5444_p11 = scmp.lt.s32.totalorder %s408_s22, %s408_s22 }
  0x33   : > { %p5437_p8 = scmp.ne.s32.totalorder %s408_s22, %s5436_s23  ;;  %p5445_p12 = scmp.lt.s32.totalorder %s5436_s23, %s5436_s23 }
  0x35   : > { %p5439_p9 = pnand %p5437_p8, %p5349_p6  ;;  %p5446_p13 = por %p5445_p12, %p5444_p11 }
  0x37   : > { %p5440_p10 = pneg %p5439_p9 }
  0x39   : > { %p5447_p0 = pnand %p5446_p13, %p5440_p10 }
  0x3b   : > { %5450 = shalt.err (!%p5447_p0)
}
  0x3c   : > { %s5481_s24 = smov 64   ;;  %s5482_s26 = smov 4  }
  0x3d   : > { %4812 = dma.hbm_to_vmem [thread:$0]  (!%p5576_p5), %s5970_s11, 2048, %s408_s22, [#allocation8], %s5481_s24, %s5481_s24, %s5482_s26  }
  0x3e   : > { %434 = sbr.rel (%p5566_p3) target bundleno = 1535 (0x5ff), region = 72 }
  0x43   : > { %5456 = dma.done.wait (%p4813_p2), [#allocation3], 8192  }
  0x44   : > { %5458 = vsyncadd (%p4813_p2), [#allocation3], 4294959104 }
  0x45   : > { %5460 = dma.done.wait (%p4813_p2), [#allocation5], 40960  }
  0x46   : > { %5462 = vsyncadd (%p4813_p2), [#allocation5], 4294926336 }
  0x47   : > { %5464 = dma.done.wait (%p4813_p2), [#allocation8], 2048  }
  0x48   : > { %5466 = vsyncadd (%p4813_p2), [#allocation8], 4294965248  ;;  %vm546_vm0 = vcmask 1040384   ;;  %p488_p3 = scmp.lt.s32.totalorder %s5561_s28, 1  ;;  %vm547_vm1 = vcmask 1041408   ;;  %v5483_v0 = vmov 65535  }
  0x49   : > { %v548_v1 = vsel %vm546_vm0, 4294967295, %v5483_v0  ;;  %vm533_vm2 = vcmask 23552   ;;  %v505_v3 = vld [vmem:[%s5960_s1] sm:$0x3]  ;;  %v4847_v8 = vld [vmem:[%s5962_s3 + $0x18] sm:$0xff]   ;;  %v4848_v10 = vld [vmem:[%s5962_s3 + $0x10] sm:$0xff]  }
  0x4a   : > { %s5976_s28 = smov (!%p488_p3, %s5561_s28), 1  ;;  %v549_v2 = vsel %vm547_vm1, %v548_v1, 0  ;;  %v4849_v11 = vld [vmem:[%s5962_s3 + $0x8] sm:$0xff]   ;;  %v4850_v12 = vld [vmem:[%s5962_s3] sm:$0xff]   ;;  %v5659_v15 = vld [vmem:[#allocation2 + $0x1c8] sm:$0xff]  ;;  %vm669_vm3 = vcmask 523264  }
  0x4b   : > { %s4722_s29 = sshll.u32 %s5976_s28, 5  ;;  %v551_v4 = vand.u32 %v549_v2, %v505_v3  ;;  %v815_v13 = vld [vmem:[#allocation2 + $0x1c0] sm:$0xff]  ;;  %v5661_v17 = vld [vmem:[#allocation2 + $0x1e8] sm:$0xff]  ;;  %v4302_v39 = vld [vmem:[%s5961_s2] ss:$0 sm:$0xff]  ;;  %s495_s27 = scalar_lea.vmem %s5972_s13, %s5976_s28 }
  0x4c   : > { %s492_s16 = scalar_lea.vmem %s5959_s0, %s4722_s29  ;;  %v819_v14 = vld [vmem:[#allocation2 + $0x1e0] sm:$0xff]  ;;  %v4378_v21 = vcombine.low %v5659_v15, %v5661_v17  ;;  %v4379_v22 = vcombine.high %v5659_v15, %v5661_v17  ;;  %v808_v50 = vld [vmem:[#allocation2 + $0x188] sm:$0xff] }
  0x4d   : > { %v4843_v5 = vld [vmem:[%s492_s16] sm:$0xff]   ;;  %4758 = vmatprep.subr.bf16.mxu1 %v551_v4  ;;  %v4844_v6 = vld [vmem:[%s492_s16 + $0x8] sm:$0xff]   ;;  %v4845_v7 = vld [vmem:[%s492_s16 + $0x10] sm:$0xff]   ;;  %v4377_v16 = vcombine.high %v815_v13, %v819_v14  ;;  %v4376_v18 = vcombine.low %v815_v13, %v819_v14 }
  0x4e   : > { %4760 = vmatprep.mubr.msk.bf16.mxu1 %vm533_vm2, %v4843_v5  ;;  %4759 = vmatpush3.bf16.msra.mxu1 %v551_v4  ;;  %v4846_v9 = vld [vmem:[%s492_s16 + $0x18] sm:$0xff]   ;;  %v807_v19 = vld [vmem:[#allocation2 + $0x180] sm:$0xff]  ;;  %v812_v51 = vld [vmem:[#allocation2 + $0x1a8] sm:$0xff] }
  0x4f   : > { %4768 = vmatprep.subr.bf16.mxu1 %v4847_v8  ;;  %v811_v20 = vld [vmem:[#allocation2 + $0x1a0] sm:$0xff]  ;;  %1185 = vmatprep.subr.bf16.mxu0 %v4377_v16  ;;  %v4371_v59 = vcombine.high %v808_v50, %v812_v51  ;;  %v800_v61 = vld [vmem:[#allocation2 + $0x148] sm:$0xff]  ;;  %v4370_v4 = vcombine.low %v808_v50, %v812_v51 }
  0x50   : > { %v4369_v23 = vcombine.high %v807_v19, %v811_v20  ;;  %v799_v24 = vld [vmem:[#allocation2 + $0x140] sm:$0xff]  ;;  %1186 = vmatpush1.bf16.msra.mxu0 %v4376_v18  ;;  %v4368_v26 = vcombine.low %v807_v19, %v811_v20  ;;  %v804_v62 = vld [vmem:[#allocation2 + $0x168] sm:$0xff] }
  0x51   : > { %4761 = vmatmul.mubr.msk.bf16.vlgmr.msra.gmra.mxu1 %vm533_vm2, %v4844_v6  ;;  %v803_v25 = vld [vmem:[#allocation2 + $0x160] sm:$0xff]  ;;  %v4363_v5 = vcombine.high %v800_v61, %v804_v62  ;;  %v784_v13 = vld [vmem:[#allocation2 + $0xc8] sm:$0xff] }
  0x52   : > { %4764 = vmatprep.mubr.msk.bf16.mxu1 %vm533_vm2, %v4845_v7  ;;  %4769 = vmatpush3.bf16.msra.mxu1 %v4847_v8  ;;  %v4361_v27 = vcombine.high %v799_v24, %v803_v25  ;;  %v791_v28 = vld [vmem:[#allocation2 + $0x100] sm:$0xff]  ;;  %v4360_v30 = vcombine.low %v799_v24, %v803_v25  ;;  %v792_v7 = vld [vmem:[#allocation2 + $0x108] sm:$0xff] }
  0x53   : > { %4770 = vmatprep.subr.bf16.mxu1 %v4848_v10  ;;  %1187 = vmatprep.subr.bf16.mxu0 %v4369_v23  ;;  %v795_v29 = vld [vmem:[#allocation2 + $0x120] sm:$0xff]  ;;  %v796_v8 = vld [vmem:[#allocation2 + $0x128] sm:$0xff] }
  0x54   : > { %1188 = vmatpush1.bf16.msra.mxu0 %v4368_v26  ;;  %v783_v31 = vld [vmem:[#allocation2 + $0xc0] sm:$0xff]  ;;  %v4353_v33 = vcombine.high %v791_v28, %v795_v29  ;;  %v4352_v34 = vcombine.low %v791_v28, %v795_v29  ;;  %v788_v14 = vld [vmem:[#allocation2 + $0xe8] sm:$0xff]  ;;  %v4354_v15 = vcombine.low %v792_v7, %v796_v8 }
  0x55   : > { %v787_v32 = vld [vmem:[#allocation2 + $0xe0] sm:$0xff]  ;;  %1189 = vmatprep.subr.bf16.mxu0 %v4361_v27  ;;  %v4347_v16 = vcombine.high %v784_v13, %v788_v14  ;;  %v4346_v17 = vcombine.low %v784_v13, %v788_v14  ;;  %v776_v20 = vld [vmem:[#allocation2 + $0x88] sm:$0xff] }
  0x56   : > { %4771 = vmatpush3.bf16.msra.mxu1 %v4848_v10  ;;  %v4345_v35 = vcombine.high %v783_v31, %v787_v32  ;;  %v4344_v36 = vcombine.low %v783_v31, %v787_v32  ;;  %v775_v18 = vld [vmem:[#allocation2 + $0x80] sm:$0xff]  ;;  %v768_v28 = vld [vmem:[#allocation2 + $0x48] sm:$0xff] }
  0x57   : > { %4772 = vmatprep.subr.bf16.mxu1 %v4849_v11  ;;  %v779_v19 = vld [vmem:[#allocation2 + $0xa0] sm:$0xff] }
  0x58   : > { %1190 = vmatpush1.bf16.msra.mxu0 %v4360_v30  ;;  %v4336_v25 = vcombine.low %v775_v18, %v779_v19  ;;  %v767_v26 = vld [vmem:[#allocation2 + $0x40] sm:$0xff]  ;;  %v772_v30 = vld [vmem:[#allocation2 + $0x68] sm:$0xff] }
  0x59   : > { %4765 = vmatmul.mubr.msk.bf16.gmra.mxu1 %vm533_vm2, %v4846_v9  ;;  %1191 = vmatprep.subr.bf16.mxu0 %v4353_v33  ;;  %v771_v27 = vld [vmem:[#allocation2 + $0x60] sm:$0xff]  ;;  %v4330_v31 = vcombine.low %v768_v28, %v772_v30  ;;  %v4331_v32 = vcombine.high %v768_v28, %v772_v30  ;;  %v789_v30 = vld [vmem:[#allocation2 + $0xf0] sm:$0xff] }
  0x5a   : > { %4773 = vmatpush3.bf16.msra.mxu1 %v4849_v11  ;;  %v4362_v11 = vcombine.low %v800_v61, %v804_v62  ;;  %v4329_v29 = vcombine.high %v767_v26, %v771_v27  ;;  %v4328_v33 = vcombine.low %v767_v26, %v771_v27  ;;  %v810_v61 = vld [vmem:[#allocation2 + $0x198] sm:$0xff] }
  0x5b   : > { %4774 = vmatprep.subr.bf16.mxu1 %v4850_v12  ;;  %v814_v62 = vld [vmem:[#allocation2 + $0x1b8] sm:$0xff] }
  0x5c   : > { %1192 = vmatpush1.bf16.msra.mxu0 %v4352_v34  ;;  %v759_v34 = vld [vmem:[#allocation2] sm:$0xff]  ;;  %v4374_v13 = vcombine.low %v810_v61, %v814_v62 }
  0x5d   : > { %1193 = vmatprep.subr.bf16.mxu0 %v4345_v35  ;;  %v763_v35 = vld [vmem:[#allocation2 + $0x20] sm:$0xff] }
  0x5e   : > { %4775 = vmatpush3.bf16.msra.mxu1 %v4850_v12  ;;  %v4355_v12 = vcombine.high %v792_v7, %v796_v8  ;;  %v805_v8 = vld [vmem:[#allocation2 + $0x170] sm:$0xff] }
  0x5f   : > { %1258 = vmatprep.subr.bf16.mxu1 %v4379_v22  ;;  %v780_v22 = vld [vmem:[#allocation2 + $0xa8] sm:$0xff] }
  0x60   : > { %1194 = vmatpush1.bf16.msra.mxu0 %v4344_v36  ;;  %v4338_v23 = vcombine.low %v776_v20, %v780_v22  ;;  %v4339_v24 = vcombine.high %v776_v20, %v780_v22  ;;  %v760_v36 = vld [vmem:[#allocation2 + $0x8] sm:$0xff]  ;;  %v794_v20 = vld [vmem:[#allocation2 + $0x118] sm:$0xff] }
 0x111   : > { %v4762_v37 = vpop.f32.mrf.mxu1 }
 0x112   : > { %v596_v43 = vadd.f32 %v4762_v37, %v4302_v39  ;;  %v4321_v37 = vcombine.high %v759_v34, %v763_v35 }
 0x113   : > { %v587_v38 = vpop.f32.mrf.mxu1 }
 0x114   : > { %v588_v41 = vadd.f32 %v4302_v39, %v587_v38  ;;  %v620_v52 = vmax.f32 %v596_v43, 0.0  ;;  %v764_v38 = vld [vmem:[#allocation2 + $0x28] sm:$0xff]  ;;  %v821_v43 = vld [vmem:[#allocation2 + $0x1f0] sm:$0xff] }
 0x115   : > { %v4763_v40 = vpop.f32.mrf.mxu1 }
 0x116   : > { %v599_v42 = vadd.f32 %v4763_v40, %v4302_v39  ;;  %v618_v48 = vmax.f32 %v588_v41, 0.0  ;;  %v4323_v40 = vcombine.high %v760_v36, %v764_v38  ;;  %v4320_v41 = vcombine.low %v759_v34, %v763_v35 }
 0x117   : > { %v590_v44 = vpop.f32.mrf.mxu1 }
 0x118   : > { %v591_v45 = vadd.f32 %v4302_v39, %v590_v44  ;;  %v621_v46 = vmax.f32 %v599_v42, 0.0  ;;  %v817_v42 = vld [vmem:[#allocation2 + $0x1d0] sm:$0xff]  ;;  %v818_v44 = vld [vmem:[#allocation2 + $0x1d8] sm:$0xff] }
 0x119   : > { %v4766_v47 = vpop.f32.mrf.mxu1 }
 0x11a   : > { %v619_v49 = vmax.f32 %v591_v45, 0.0  ;;  %v612_v53 = vadd.f32 %v4766_v47, %v4302_v39  ;;  %v627_v57 = vpack.c.bf16 %v621_v46, %v620_v52  ;;  %v4381_v45 = vcombine.high %v817_v42, %v821_v43  ;;  %v822_v46 = vld [vmem:[#allocation2 + $0x1f8] sm:$0xff] }
 0x11b   : > { %v603_v54 = vpop.f32.mrf.mxu1  ;;  %v5484_v47 = vmov 0   ;;  %v4383_v50 = vcombine.high %v818_v44, %v822_v46 }
 0x11c   : > { %v626_v55 = vpack.c.bf16 %v619_v49, %v618_v48  ;;  %v604_v56 = vadd.f32 %v4302_v39, %v603_v54  ;;  %v624_v63 = vmax.f32 %v612_v53, 0.0  ;;  %1217 = vmatprep.mubr.bf16.mxu0 %v5484_v47  ;;  %v4380_v48 = vcombine.low %v817_v42, %v821_v43  ;;  %v5679_v53 = vld [vmem:[%s5963_s4] ss:$0 sm:$0xff] }
 0x11d   : > { %v4767_v58 = vpop.f32.mrf.mxu1  ;;  %v4382_v49 = vcombine.low %v818_v44, %v822_v46  ;;  %v782_v42 = vld [vmem:[#allocation2 + $0xb8] sm:$0xff] }
 0x11e   : > { %v615_v60 = vadd.f32 %v4767_v58, %v4302_v39  ;;  %4776 = vmatprep.mubr.msk.bf16.mxu1 %vm669_vm3, %v626_v55  ;;  %v622_v1 = vmax.f32 %v604_v56, 0.0  ;;  %v809_v58 = vld [vmem:[#allocation2 + $0x190] sm:$0xff] }
 0x11f   : > { %v606_v0 = vpop.f32.mrf.mxu1  ;;  %4777 = vmatmul.mubr.msk.bf16.vlgmr.msra.gmra.mxu1 %vm669_vm3, %v627_v57 }
 0x120   : > { %v625_v2 = vmax.f32 %v615_v60, 0.0  ;;  %v607_v3 = vadd.f32 %v4302_v39, %v606_v0  ;;  %1259 = vmatpush1.bf16.msra.mxu1 %v4378_v21  ;;  %v4337_v21 = vcombine.high %v775_v18, %v779_v19  ;;  %v4322_v39 = vcombine.low %v760_v36, %v764_v38  ;;  %v813_v60 = vld [vmem:[#allocation2 + $0x1b0] sm:$0xff] }
 0x121   : > { %1260 = vmatprep.subr.bf16.mxu1 %v4371_v59  ;;  %v797_v18 = vld [vmem:[#allocation2 + $0x130] sm:$0xff] }
 0x122   : > { %v623_v6 = vmax.f32 %v607_v3, 0.0  ;;  %v629_v9 = vpack.c.bf16 %v625_v2, %v624_v63  ;;  %1195 = vmatprep.subr.bf16.mxu0 %v4337_v21  ;;  %v798_v21 = vld [vmem:[#allocation2 + $0x138] sm:$0xff] }
 0x123   : > { %1196 = vmatpush1.bf16.msra.mxu0 %v4336_v25  ;;  %v4359_v28 = vcombine.high %v794_v20, %v798_v21  ;;  %v4358_v35 = vcombine.low %v794_v20, %v798_v21  ;;  %v4863_v20 = vld [vmem:[#allocation4 + $0xa0] ss:$16 sps:$4 sm:$0xff]  }
 0x124   : > { %v628_v10 = vpack.c.bf16 %v623_v6, %v622_v1  ;;  %1261 = vmatpush1.bf16.msra.mxu1 %v4370_v4  ;;  %1197 = vmatprep.subr.bf16.mxu0 %v4329_v29  ;;  %v4373_v4 = vcombine.high %v809_v58, %v813_v60  ;;  %v801_v6 = vld [vmem:[#allocation2 + $0x150] sm:$0xff] }
 0x125   : > { %1262 = vmatprep.subr.bf16.mxu1 %v4363_v5  ;;  %v4375_v5 = vcombine.high %v810_v61, %v814_v62  ;;  %v785_v29 = vld [vmem:[#allocation2 + $0xd0] sm:$0xff] }
 0x126   : > { %4780 = vmatprep.mubr.msk.bf16.mxu1 %vm669_vm3, %v628_v10  ;;  %v806_v10 = vld [vmem:[#allocation2 + $0x178] sm:$0xff]  ;;  %v4348_v44 = vcombine.low %v785_v29, %v789_v30  ;;  %v4866_v21 = vld [vmem:[#allocation4 + $0x2a0] ss:$16 sps:$4 sm:$0xff]  }
 0x127   : > { %4781 = vmatmul.mubr.msk.bf16.gmra.mxu1 %vm669_vm3, %v629_v9  ;;  %1198 = vmatpush1.bf16.msra.mxu0 %v4328_v33  ;;  %v802_v9 = vld [vmem:[#allocation2 + $0x158] sm:$0xff] }
 0x128   : > { %1263 = vmatpush1.bf16.msra.mxu1 %v4362_v11  ;;  %1199 = vmatprep.subr.bf16.mxu0 %v4321_v37  ;;  %v4349_v37 = vcombine.high %v785_v29, %v789_v30  ;;  %v4883_v29 = vld [vmem:[#allocation4 + $0x44] ss:$16 sps:$4 sm:$0xff]  }
 0x129   : > { %1264 = vmatprep.subr.bf16.mxu1 %v4355_v12  ;;  %1290 = vmatprep.mubr.bf16.mxu1 %v5484_v47  ;;  %v4372_v12 = vcombine.low %v809_v58, %v813_v60  ;;  %v4886_v30 = vld [vmem:[#allocation4 + $0x244] ss:$16 sps:$4 sm:$0xff]  }
 0x12b   : > { %1200 = vmatpush1.bf16.msra.mxu0 %v4320_v41  ;;  %v778_v41 = vld [vmem:[#allocation2 + $0x98] sm:$0xff] }
 0x12c   : > { %1265 = vmatpush1.bf16.msra.mxu1 %v4354_v15  ;;  %1331 = vmatprep.subr.bf16.mxu0 %v4381_v45  ;;  %v4365_v15 = vcombine.high %v801_v6, %v805_v8  ;;  %v4342_v58 = vcombine.low %v778_v41, %v782_v42 }
 0x12d   : > { %1266 = vmatprep.subr.bf16.mxu1 %v4347_v16  ;;  %v4367_v16 = vcombine.high %v802_v9, %v806_v10 }
 0x130   : > { %1267 = vmatpush1.bf16.msra.mxu1 %v4346_v17  ;;  %v793_v17 = vld [vmem:[#allocation2 + $0x110] sm:$0xff] }
 0x131   : > { %1268 = vmatprep.subr.bf16.mxu1 %v4339_v24  ;;  %v4366_v24 = vcombine.low %v802_v9, %v806_v10  ;;  %v4357_v25 = vcombine.high %v793_v17, %v797_v18  ;;  %v4356_v34 = vcombine.low %v793_v17, %v797_v18  ;;  %v4853_v10 = vld [vmem:[#allocation4 + $0xe4] ss:$16 sps:$4 sm:$0xff]   ;;  %v4860_v17 = vld [vmem:[#allocation4 + $0x2c0] ss:$16 sps:$4 sm:$0xff]  }
 0x132   : > { %v4865_v18 = vld [vmem:[#allocation4 + $0xa4] ss:$16 sps:$4 sm:$0xff]  }
 0x134   : > { %1269 = vmatpush1.bf16.msra.mxu1 %v4338_v23  ;;  %v4364_v23 = vcombine.low %v801_v6, %v805_v8 }
 0x135   : > { %1270 = vmatprep.subr.bf16.mxu1 %v4331_v32  ;;  %v790_v32 = vld [vmem:[#allocation2 + $0xf8] sm:$0xff] }
 0x138   : > { %1271 = vmatpush1.bf16.msra.mxu1 %v4330_v31  ;;  %v786_v31 = vld [vmem:[#allocation2 + $0xd8] sm:$0xff] }
 0x139   : > { %1272 = vmatprep.subr.bf16.mxu1 %v4323_v40  ;;  %v4351_v38 = vcombine.high %v786_v31, %v790_v32  ;;  %v781_v40 = vld [vmem:[#allocation2 + $0xb0] sm:$0xff]  ;;  %v4350_v45 = vcombine.low %v786_v31, %v790_v32 }
 0x13a   : > { %v4881_v31 = vld [vmem:[#allocation4 + $0x40] ss:$16 sps:$4 sm:$0xff]  }
 0x13b   : > { %v4884_v32 = vld [vmem:[#allocation4 + $0x240] ss:$16 sps:$4 sm:$0xff]  }
 0x13c   : > { %1273 = vmatpush1.bf16.msra.mxu1 %v4322_v39  ;;  %v777_v39 = vld [vmem:[#allocation2 + $0x90] sm:$0xff] }
 0x13d   : > { %1404 = vmatprep.subr.bf16.mxu1 %v4383_v50  ;;  %v4341_v46 = vcombine.high %v777_v39, %v781_v40  ;;  %v4343_v50 = vcombine.high %v778_v41, %v782_v42  ;;  %v4904_v41 = vld [vmem:[#allocation4 + $0x3e4] ss:$16 sps:$4 sm:$0xff]   ;;  %v4899_v42 = vld [vmem:[#allocation4 + $0x1e0] ss:$16 sps:$4 sm:$0xff]  }
 0x1df   : > { %v4778_v51 = vpop.f32.mrf.mxu1 }
 0x1e0   : > { %v725_v11 = vadd.f32 %v4778_v51, %v5679_v53  ;;  %v769_v51 = vld [vmem:[#allocation2 + $0x50] sm:$0xff] }
 0x1e1   : > { %v716_v52 = vpop.f32.mrf.mxu1 }
 0x1e2   : > { %v717_v55 = vadd.f32 %v5679_v53, %v716_v52  ;;  %v749_v22 = vmax.f32 %v725_v11, 0.0  ;;  %v773_v52 = vld [vmem:[#allocation2 + $0x70] sm:$0xff] }
 0x1e3   : > { %v4779_v54 = vpop.f32.mrf.mxu1  ;;  %v4333_v61 = vcombine.high %v769_v51, %v773_v52  ;;  %v4856_v11 = vld [vmem:[#allocation4 + $0x2e4] ss:$16 sps:$4 sm:$0xff]  }
 0x1e4   : > { %v747_v63 = vmax.f32 %v717_v55, 0.0  ;;  %v728_v2 = vadd.f32 %v4779_v54, %v5679_v53  ;;  %v770_v54 = vld [vmem:[#allocation2 + $0x58] sm:$0xff] }
 0x1e5   : > { %v719_v56 = vpop.f32.mrf.mxu1  ;;  %v774_v55 = vld [vmem:[#allocation2 + $0x78] sm:$0xff] }
 0x1e6   : > { %v720_v57 = vadd.f32 %v5679_v53, %v719_v56  ;;  %v750_v14 = vmax.f32 %v728_v2, 0.0  ;;  %v4335_v62 = vcombine.high %v770_v54, %v774_v55  ;;  %v4332_v2 = vcombine.low %v769_v51, %v773_v52  ;;  %v4911_v51 = vld [vmem:[#allocation4 + $0x1a0] ss:$16 sps:$4 sm:$0xff]  }
 0x1e7   : > { %v5683_v59 = vpop.f32.mrf.mxu1  ;;  %v4914_v52 = vld [vmem:[#allocation4 + $0x3a0] ss:$16 sps:$4 sm:$0xff]  }
 0x1e8   : > { %v748_v0 = vmax.f32 %v720_v57, 0.0  ;;  %v5693_v26 = vpack.c.bf16 %v750_v14, %v749_v22  ;;  %v741_v56 = vadd.f32 %v5683_v59, %v5679_v53  ;;  %v4340_v57 = vcombine.low %v777_v39, %v781_v40  ;;  %v766_v59 = vld [vmem:[#allocation2 + $0x38] sm:$0xff]  ;;  %v4859_v14 = vld [vmem:[#allocation4 + $0xc4] ss:$16 sps:$4 sm:$0xff]   ;;  %v4896_v39 = vld [vmem:[#allocation4 + $0x200] ss:$16 sps:$4 sm:$0xff]  }
 0x1e9   : > { %v732_v1 = vpop.f32.mrf.mxu1  ;;  %v4871_v22 = vld [vmem:[#allocation4 + $0x84] ss:$16 sps:$4 sm:$0xff]  }
 0x1ea   : > { %v5686_v3 = vpack.c.bf16 %v748_v0, %v747_v63  ;;  %v733_v33 = vadd.f32 %v5679_v53, %v732_v1  ;;  %v761_v63 = vld [vmem:[#allocation2 + $0x10] sm:$0xff]  ;;  %v753_v1 = vmax.f32 %v741_v56, 0.0 }
 0x1eb   : > { %v4783_v7 = vpop.f32.mrf.mxu1  ;;  %v765_v0 = vld [vmem:[#allocation2 + $0x30] sm:$0xff] }
 0x1ec   : > { %1218 = vmatmul.mubr.bf16.vlgmr.msra.gmra.mxu0 %v5686_v3  ;;  %1291 = vmatmul.mubr.bf16.vlgmr.msra.gmra.mxu1 %v5686_v3  ;;  %v751_v43 = vmax.f32 %v733_v33, 0.0  ;;  %v4325_v6 = vcombine.high %v761_v63, %v765_v0  ;;  %v4324_v8 = vcombine.low %v761_v63, %v765_v0  ;;  %v4889_v33 = vld [vmem:[#allocation4 + $0x24] ss:$16 sps:$4 sm:$0xff]   ;;  %v4917_v56 = vld [vmem:[#allocation4 + $0x180] ss:$16 sps:$4 sm:$0xff]  }
 0x1ed   : > { %1332 = vmatpush1.bf16.msra.mxu0 %v4380_v48  ;;  %1405 = vmatpush1.bf16.msra.mxu1 %v4382_v49  ;;  %v735_v19 = vpop.f32.mrf.mxu1  ;;  %v744_v48 = vadd.f32 %v4783_v7, %v5679_v53  ;;  %v4901_v40 = vld [vmem:[#allocation4 + $0x1e4] ss:$16 sps:$4 sm:$0xff]  }
 0x1ee   : > { %1333 = vmatprep.subr.bf16.mxu0 %v4373_v4  ;;  %1406 = vmatprep.subr.bf16.mxu1 %v4375_v5  ;;  %v736_v27 = vadd.f32 %v5679_v53, %v735_v19  ;;  %v762_v53 = vld [vmem:[#allocation2 + $0x18] sm:$0xff]  ;;  %v4334_v4 = vcombine.low %v770_v54, %v774_v55  ;;  %v4868_v19 = vld [vmem:[#allocation4 + $0x2a4] ss:$16 sps:$4 sm:$0xff]  }
 0x1ef   : > { %1227 = vmatprep.mubr.bf16.mxu0 %v5484_v47  ;;  %1300 = vmatprep.mubr.bf16.mxu1 %v5484_v47  ;;  %v754_v60 = vmax.f32 %v744_v48, 0.0  ;;  %v4327_v7 = vcombine.high %v762_v53, %v766_v59  ;;  %v4326_v9 = vcombine.low %v762_v53, %v766_v59  ;;  %v4908_v48 = vld [vmem:[#allocation4 + $0x3c0] ss:$16 sps:$4 sm:$0xff]   ;;  %v4919_v54 = vld [vmem:[#allocation4 + $0x184] ss:$16 sps:$4 sm:$0xff]  }
 0x1f0   : > { %v752_v36 = vmax.f32 %v736_v27, 0.0  ;;  %v4875_v27 = vld [vmem:[#allocation4 + $0x60] ss:$16 sps:$4 sm:$0xff]   ;;  %v4922_v55 = vld [vmem:[#allocation4 + $0x384] ss:$16 sps:$4 sm:$0xff]  }
 0x1f1   : > { %1334 = vmatpush1.bf16.msra.mxu0 %v4372_v12  ;;  %1407 = vmatpush1.bf16.msra.mxu1 %v4374_v13  ;;  %v758_v5 = vpack.c.bf16 %v754_v60, %v753_v1  ;;  %v4851_v12 = vld [vmem:[#allocation4 + $0xe0] ss:$16 sps:$4 sm:$0xff]   ;;  %v4928_v60 = vld [vmem:[#allocation4 + $0x364] ss:$16 sps:$4 sm:$0xff]  }
 0x1f2   : > { %1335 = vmatprep.subr.bf16.mxu0 %v4365_v15  ;;  %1408 = vmatprep.subr.bf16.mxu1 %v4367_v16  ;;  %v5702_v49 = vpack.c.bf16 %v752_v36, %v751_v43  ;;  %v4854_v13 = vld [vmem:[#allocation4 + $0x2e0] ss:$16 sps:$4 sm:$0xff]   ;;  %v4862_v15 = vld [vmem:[#allocation4 + $0x2c4] ss:$16 sps:$4 sm:$0xff]  }
 0x1f3   : > { %v4857_v16 = vld [vmem:[#allocation4 + $0xc0] ss:$16 sps:$4 sm:$0xff]   ;;  %v4895_v36 = vld [vmem:[#allocation4 + $0x4] ss:$16 sps:$4 sm:$0xff]  }
 0x1f4   : > { %1228 = vmatmul.mubr.bf16.gmra.mxu0 %v5693_v26  ;;  %1301 = vmatmul.mubr.bf16.gmra.mxu1 %v5693_v26  ;;  %v4902_v43 = vld [vmem:[#allocation4 + $0x3e0] ss:$16 sps:$4 sm:$0xff]   ;;  %v4931_v63 = vld [vmem:[#allocation4 + $0x144] ss:$16 sps:$4 sm:$0xff]  }
 0x1f5   : > { %1336 = vmatpush1.bf16.msra.mxu0 %v4364_v23  ;;  %1409 = vmatpush1.bf16.msra.mxu1 %v4366_v24  ;;  %v4869_v23 = vld [vmem:[#allocation4 + $0x80] ss:$16 sps:$4 sm:$0xff]   ;;  %v4934_v0 = vld [vmem:[#allocation4 + $0x344] ss:$16 sps:$4 sm:$0xff]  }
 0x1f6   : > { %1337 = vmatprep.subr.bf16.mxu0 %v4357_v25  ;;  %1410 = vmatprep.subr.bf16.mxu1 %v4359_v28  ;;  %v4872_v24 = vld [vmem:[#allocation4 + $0x280] ss:$16 sps:$4 sm:$0xff]   ;;  %v4877_v25 = vld [vmem:[#allocation4 + $0x64] ss:$16 sps:$4 sm:$0xff]  }
 0x1f7   : > { %1237 = vmatprep.mubr.bf16.mxu0 %v5484_v47  ;;  %1310 = vmatprep.mubr.bf16.mxu1 %v5484_v47  ;;  %v4878_v28 = vld [vmem:[#allocation4 + $0x260] ss:$16 sps:$4 sm:$0xff]   ;;  %v4937_v1 = vld [vmem:[#allocation4 + $0x124] ss:$16 sps:$4 sm:$0xff]  }
 0x1f8   : > { %v4929_v53 = vld [vmem:[#allocation4 + $0x140] ss:$16 sps:$4 sm:$0xff]  }
 0x1f9   : > { %1338 = vmatpush1.bf16.msra.mxu0 %v4356_v34  ;;  %1411 = vmatpush1.bf16.msra.mxu1 %v4358_v35  ;;  %v4887_v34 = vld [vmem:[#allocation4 + $0x20] ss:$16 sps:$4 sm:$0xff]  }
 0x1fa   : > { %1339 = vmatprep.subr.bf16.mxu0 %v4349_v37  ;;  %1412 = vmatprep.subr.bf16.mxu1 %v4351_v38  ;;  %v4890_v35 = vld [vmem:[#allocation4 + $0x220] ss:$16 sps:$4 sm:$0xff]   ;;  %v4898_v37 = vld [vmem:[#allocation4 + $0x204] ss:$16 sps:$4 sm:$0xff]  }
 0x1fb   : > { %v4893_v38 = vld [vmem:[#allocation4] ss:$16 sps:$4 sm:$0xff]  }
 0x1fc   : > { %1238 = vmatmul.mubr.bf16.gmra.mxu0 %v5702_v49  ;;  %1311 = vmatmul.mubr.bf16.gmra.mxu1 %v5702_v49  ;;  %v4932_v59 = vld [vmem:[#allocation4 + $0x340] ss:$16 sps:$4 sm:$0xff]  }
 0x1fd   : > { %1340 = vmatpush1.bf16.msra.mxu0 %v4348_v44  ;;  %1413 = vmatpush1.bf16.msra.mxu1 %v4350_v45  ;;  %v4907_v44 = vld [vmem:[#allocation4 + $0x1c4] ss:$16 sps:$4 sm:$0xff]  }
 0x1fe   : > { %1341 = vmatprep.subr.bf16.mxu0 %v4341_v46  ;;  %1414 = vmatprep.subr.bf16.mxu1 %v4343_v50  ;;  %v4910_v45 = vld [vmem:[#allocation4 + $0x3c4] ss:$16 sps:$4 sm:$0xff]   ;;  %v4905_v46 = vld [vmem:[#allocation4 + $0x1c0] ss:$16 sps:$4 sm:$0xff]  }
 0x1ff   : > { %1247 = vmatprep.mubr.bf16.mxu0 %v5484_v47  ;;  %1320 = vmatprep.mubr.bf16.mxu1 %v5484_v47  ;;  %v4916_v50 = vld [vmem:[#allocation4 + $0x3a4] ss:$16 sps:$4 sm:$0xff]  }
 0x201   : > { %1342 = vmatpush1.bf16.msra.mxu0 %v4340_v57  ;;  %1415 = vmatpush1.bf16.msra.mxu1 %v4342_v58  ;;  %v4920_v57 = vld [vmem:[#allocation4 + $0x380] ss:$16 sps:$4 sm:$0xff]   ;;  %v4925_v58 = vld [vmem:[#allocation4 + $0x164] ss:$16 sps:$4 sm:$0xff]  }
 0x202   : > { %1343 = vmatprep.subr.bf16.mxu0 %v4333_v61  ;;  %1416 = vmatprep.subr.bf16.mxu1 %v4335_v62  ;;  %v4923_v61 = vld [vmem:[#allocation4 + $0x160] ss:$16 sps:$4 sm:$0xff]  }
 0x203   : > { %v4926_v62 = vld [vmem:[#allocation4 + $0x360] ss:$16 sps:$4 sm:$0xff]  }
 0x204   : > { %1248 = vmatmul.mubr.bf16.gmra.mxu0 %v758_v5  ;;  %1321 = vmatmul.mubr.bf16.gmra.mxu1 %v758_v5 }
 0x205   : > { %1344 = vmatpush1.bf16.msra.mxu0 %v4332_v2  ;;  %1417 = vmatpush1.bf16.msra.mxu1 %v4334_v4  ;;  %v4940_v2 = vld [vmem:[#allocation4 + $0x324] ss:$16 sps:$4 sm:$0xff]   ;;  %v4935_v4 = vld [vmem:[#allocation4 + $0x120] ss:$16 sps:$4 sm:$0xff]  }
 0x206   : > { %1345 = vmatprep.subr.bf16.mxu0 %v4325_v6  ;;  %1418 = vmatprep.subr.bf16.mxu1 %v4327_v7  ;;  %v4943_v6 = vld [vmem:[#allocation4 + $0x104] ss:$16 sps:$4 sm:$0xff]  }
 0x207   : > { %1363 = vmatprep.mubr.bf16.mxu0 %v5484_v47  ;;  %1436 = vmatprep.mubr.bf16.mxu1 %v5484_v47  ;;  %v4946_v7 = vld [vmem:[#allocation4 + $0x304] ss:$16 sps:$4 sm:$0xff]  }
 0x209   : > { %1346 = vmatpush1.bf16.msra.mxu0 %v4324_v8  ;;  %1419 = vmatpush1.bf16.msra.mxu1 %v4326_v9  ;;  %v4941_v8 = vld [vmem:[#allocation4 + $0x100] ss:$16 sps:$4 sm:$0xff]  }
 0x20a   : > { %3211 = vmatprep.subr.bf16.mxu0 %v4853_v10  ;;  %3252 = vmatprep.subr.bf16.mxu1 %v4856_v11  ;;  %v4944_v9 = vld [vmem:[#allocation4 + $0x300] ss:$16 sps:$4 sm:$0xff]   ;;  %v4949_v10 = vld [vmem:[#allocation4 + $0x4e4] ss:$16 sps:$4 sm:$0xff]  }
 0x20b   : > { %v4952_v11 = vld [vmem:[#allocation4 + $0x6e4] ss:$16 sps:$4 sm:$0xff]  }
 0x20c   : > { %1364 = vmatmul.mubr.bf16.vlgmr.msra.gmra.mxu0 %v5686_v3  ;;  %1437 = vmatmul.mubr.bf16.vlgmr.msra.gmra.mxu1 %v5686_v3  ;;  %v4874_v3 = vld [vmem:[#allocation4 + $0x284] ss:$16 sps:$4 sm:$0xff]  }
 0x20d   : > { %1373 = vmatprep.mubr.bf16.mxu0 %v5484_v47  ;;  %1446 = vmatprep.mubr.bf16.mxu1 %v5484_v47 }
 0x20e   : > { %3212 = vmatpush1.bf16.msra.mxu0 %v4851_v12  ;;  %3253 = vmatpush1.bf16.msra.mxu1 %v4854_v13  ;;  %v825_v12 = vlaneseq }
 0x20f   : > { %3213 = vmatprep.subr.bf16.mxu0 %v4859_v14  ;;  %3254 = vmatprep.subr.bf16.mxu1 %v4862_v15 }
 0x210   : > { %v5724_v13 = vshrl.u32 %v825_v12, 7 }
 0x212   : > { %3214 = vmatpush1.bf16.msra.mxu0 %v4857_v16  ;;  %3255 = vmatpush1.bf16.msra.mxu1 %v4860_v17  ;;  %v5727_v16 = vsub.s32 0, %v5724_v13  ;;  %v835_v17 = vsub.s32 2, %v5724_v13 }
 0x213   : > { %3215 = vmatprep.subr.bf16.mxu0 %v4865_v18  ;;  %3256 = vmatprep.subr.bf16.mxu1 %v4868_v19 }
 0x214   : > { %1374 = vmatmul.mubr.bf16.gmra.mxu0 %v5693_v26  ;;  %1447 = vmatmul.mubr.bf16.gmra.mxu1 %v5693_v26  ;;  %v4880_v26 = vld [vmem:[#allocation4 + $0x264] ss:$16 sps:$4 sm:$0xff]  }
 0x215   : > { %1383 = vmatprep.mubr.bf16.mxu0 %v5484_v47  ;;  %1456 = vmatprep.mubr.bf16.mxu1 %v5484_v47 }
 0x216   : > { %3216 = vmatpush1.bf16.msra.mxu0 %v4863_v20  ;;  %3257 = vmatpush1.bf16.msra.mxu1 %v4866_v21  ;;  %v5733_v20 = vld [vmem:[%s5965_s6] sm:$0xff]  ;;  %v5736_v21 = vsub.s32 1, %v5724_v13 }
 0x217   : > { %3217 = vmatprep.subr.bf16.mxu0 %v4871_v22  ;;  %3258 = vmatprep.subr.bf16.mxu1 %v4874_v3  ;;  %v839_v22 = vsub.s32 3, %v5724_v13 }
 0x21a   : > { %3218 = vmatpush1.bf16.msra.mxu0 %v4869_v23  ;;  %3259 = vmatpush1.bf16.msra.mxu1 %v4872_v24  ;;  %v5741_v24 = vrot.slane %v5733_v20, %v5727_v16 }
 0x21b   : > { %3219 = vmatprep.subr.bf16.mxu0 %v4877_v25  ;;  %3260 = vmatprep.subr.bf16.mxu1 %v4880_v26  ;;  %v5746_v25 = vrot.slane %v5733_v20, %v835_v17 }
 0x21c   : > { %1384 = vmatmul.mubr.bf16.gmra.mxu0 %v5702_v49  ;;  %1457 = vmatmul.mubr.bf16.gmra.mxu1 %v5702_v49  ;;  %v4913_v49 = vld [vmem:[#allocation4 + $0x1a4] ss:$16 sps:$4 sm:$0xff]  }
 0x21d   : > { %1393 = vmatprep.mubr.bf16.mxu0 %v5484_v47  ;;  %1466 = vmatprep.mubr.bf16.mxu1 %v5484_v47  ;;  %v4892_v47 = vld [vmem:[#allocation4 + $0x224] ss:$16 sps:$4 sm:$0xff]  }
 0x21e   : > { %3220 = vmatpush1.bf16.msra.mxu0 %v4875_v27  ;;  %3261 = vmatpush1.bf16.msra.mxu1 %v4878_v28  ;;  %v5750_v28 = vrot.slane %v5733_v20, %v5736_v21 }
 0x21f   : > { %3221 = vmatprep.subr.bf16.mxu0 %v4883_v29  ;;  %3262 = vmatprep.subr.bf16.mxu1 %v4886_v30  ;;  %v5755_v29 = vrot.slane %v5733_v20, %v839_v22 }
 0x222   : > { %3222 = vmatpush1.bf16.msra.mxu0 %v4881_v31  ;;  %3263 = vmatpush1.bf16.msra.mxu1 %v4884_v32 }
 0x223   : > { %3223 = vmatprep.subr.bf16.mxu0 %v4889_v33  ;;  %3264 = vmatprep.subr.bf16.mxu1 %v4892_v47 }
 0x224   : > { %1394 = vmatmul.mubr.bf16.gmra.mxu0 %v758_v5  ;;  %1467 = vmatmul.mubr.bf16.gmra.mxu1 %v758_v5  ;;  %v4938_v5 = vld [vmem:[#allocation4 + $0x320] ss:$16 sps:$4 sm:$0xff]  }
 0x226   : > { %3224 = vmatpush1.bf16.msra.mxu0 %v4887_v34  ;;  %3265 = vmatpush1.bf16.msra.mxu1 %v4890_v35 }
 0x227   : > { %3225 = vmatprep.subr.bf16.mxu0 %v4895_v36  ;;  %3266 = vmatprep.subr.bf16.mxu1 %v4898_v37 }
 0x22a   : > { %3226 = vmatpush1.bf16.msra.mxu0 %v4893_v38  ;;  %3267 = vmatpush1.bf16.msra.mxu1 %v4896_v39 }
 0x22b   : > { %3227 = vmatprep.subr.bf16.mxu0 %v4901_v40  ;;  %3268 = vmatprep.subr.bf16.mxu1 %v4904_v41 }
 0x22e   : > { %3228 = vmatpush2.bf16.msra.mxu0 %v4899_v42  ;;  %3269 = vmatpush2.bf16.msra.mxu1 %v4902_v43 }
 0x22f   : > { %3229 = vmatprep.subr.bf16.mxu0 %v4907_v44  ;;  %3270 = vmatprep.subr.bf16.mxu1 %v4910_v45 }
 0x232   : > { %3230 = vmatpush2.bf16.msra.mxu0 %v4905_v46  ;;  %3271 = vmatpush2.bf16.msra.mxu1 %v4908_v48 }
 0x233   : > { %3231 = vmatprep.subr.bf16.mxu0 %v4913_v49  ;;  %3272 = vmatprep.subr.bf16.mxu1 %v4916_v50 }
 0x236   : > { %3232 = vmatpush2.bf16.msra.mxu0 %v4911_v51  ;;  %3273 = vmatpush2.bf16.msra.mxu1 %v4914_v52 }
 0x237   : > { %3233 = vmatprep.subr.bf16.mxu0 %v4919_v54  ;;  %3274 = vmatprep.subr.bf16.mxu1 %v4922_v55 }
 0x23a   : > { %3234 = vmatpush2.bf16.msra.mxu0 %v4917_v56  ;;  %3275 = vmatpush2.bf16.msra.mxu1 %v4920_v57 }
 0x23b   : > { %3235 = vmatprep.subr.bf16.mxu0 %v4925_v58  ;;  %3276 = vmatprep.subr.bf16.mxu1 %v4928_v60 }
 0x23e   : > { %3236 = vmatpush2.bf16.msra.mxu0 %v4923_v61  ;;  %3277 = vmatpush2.bf16.msra.mxu1 %v4926_v62 }
 0x23f   : > { %3237 = vmatprep.subr.bf16.mxu0 %v4931_v63  ;;  %3278 = vmatprep.subr.bf16.mxu1 %v4934_v0 }
 0x242   : > { %3238 = vmatpush2.bf16.msra.mxu0 %v4929_v53  ;;  %3279 = vmatpush2.bf16.msra.mxu1 %v4932_v59 }
 0x243   : > { %3239 = vmatprep.subr.bf16.mxu0 %v4937_v1  ;;  %3280 = vmatprep.subr.bf16.mxu1 %v4940_v2 }
 0x246   : > { %3240 = vmatpush2.bf16.msra.mxu0 %v4935_v4  ;;  %3281 = vmatpush2.bf16.msra.mxu1 %v4938_v5 }
 0x247   : > { %3241 = vmatprep.subr.bf16.mxu0 %v4943_v6  ;;  %3282 = vmatprep.subr.bf16.mxu1 %v4946_v7 }
 0x24a   : > { %3242 = vmatpush2.bf16.msra.mxu0 %v4941_v8  ;;  %3283 = vmatpush2.bf16.msra.mxu1 %v4944_v9 }
 0x24b   : > { %3293 = vmatprep.subr.bf16.mxu0 %v4949_v10  ;;  %3334 = vmatprep.subr.bf16.mxu1 %v4952_v11 }
 0x2ac   : > { %v1219_v14 = vpop.f32.mrf.mxu0  ;;  %v1292_v15 = vpop.f32.mrf.mxu1 }
 0x2ad   : > { %v1220_v47 = vadd.f32 %v1219_v14, %v5741_v24  ;;  %v1293_v34 = vadd.f32 %v1292_v15, %v5746_v25 }
 0x2ae   : > { %v1221_v18 = vpop.f32.mrf.mxu0  ;;  %v1294_v19 = vpop.f32.mrf.mxu1 }
 0x2af   : > { %v1222_v39 = vadd.f32 %v1221_v18, %v5750_v28  ;;  %v1295_v40 = vadd.f32 %v1294_v19, %v5755_v29  ;;  %v1477_v52 = vmax.f32 %v1220_v47, 0.0  ;;  %v1479_v54 = vmax.f32 %v1293_v34, 0.0 }
 0x2b0   : > { %v1223_v3 = vpop.f32.mrf.mxu0  ;;  %v1296_v23 = vpop.f32.mrf.mxu1 }
 0x2b1   : > { %v1224_v30 = vadd.f32 %v1223_v3, %v5741_v24  ;;  %v1297_v31 = vadd.f32 %v1296_v23, %v5746_v25  ;;  %v1478_v60 = vmax.f32 %v1222_v39, 0.0  ;;  %v1480_v61 = vmax.f32 %v1295_v40, 0.0 }
 0x2b2   : > { %v1225_v26 = vpop.f32.mrf.mxu0  ;;  %v1298_v27 = vpop.f32.mrf.mxu1 }
 0x2b3   : > { %v1226_v35 = vadd.f32 %v1225_v26, %v5750_v28  ;;  %v1299_v36 = vadd.f32 %v1298_v27, %v5755_v29  ;;  %v1485_v43 = vmax.f32 %v1224_v30, 0.0  ;;  %v1487_v44 = vmax.f32 %v1297_v31, 0.0 }
 0x2b4   : > { %v1229_v32 = vpop.f32.mrf.mxu0  ;;  %v1302_v33 = vpop.f32.mrf.mxu1 }
 0x2b5   : > { %v1230_v41 = vadd.f32 %v1229_v32, %v5741_v24  ;;  %v1303_v42 = vadd.f32 %v1302_v33, %v5746_v25  ;;  %v1486_v55 = vmax.f32 %v1226_v35, 0.0  ;;  %v1488_v56 = vmax.f32 %v1299_v36, 0.0 }
 0x2b6   : > { %v1231_v37 = vpop.f32.mrf.mxu0  ;;  %v1304_v38 = vpop.f32.mrf.mxu1  ;;  %v1541_v0 = vmax.f32 %v1477_v52, %v1485_v43  ;;  %v1567_v53 = vmax.f32 %v1479_v54, %v1487_v44 }
 0x2b7   : > { %v1232_v48 = vadd.f32 %v1231_v37, %v5750_v28  ;;  %v1305_v49 = vadd.f32 %v1304_v38, %v5755_v29  ;;  %v1493_v62 = vmax.f32 %v1230_v41, 0.0  ;;  %v1495_v63 = vmax.f32 %v1303_v42, 0.0 }
 0x2b8   : > { %v1233_v45 = vpop.f32.mrf.mxu0  ;;  %v1306_v46 = vpop.f32.mrf.mxu1  ;;  %v1554_v9 = vmax.f32 %v1478_v60, %v1486_v55  ;;  %v1580_v10 = vmax.f32 %v1480_v61, %v1488_v56 }
 0x2b9   : > { %v1234_v50 = vadd.f32 %v1233_v45, %v5741_v24  ;;  %v1307_v51 = vadd.f32 %v1306_v46, %v5746_v25  ;;  %v1494_v5 = vmax.f32 %v1232_v48, 0.0  ;;  %v1496_v6 = vmax.f32 %v1305_v49, 0.0 }
 0x2ba   : > { %v1235_v57 = vpop.f32.mrf.mxu0  ;;  %v1308_v58 = vpop.f32.mrf.mxu1  ;;  %v1542_v18 = vmax.f32 %v1541_v0, %v1493_v62  ;;  %v1568_v19 = vmax.f32 %v1567_v53, %v1495_v63 }
 0x2bb   : > { %v1236_v59 = vadd.f32 %v1235_v57, %v5750_v28  ;;  %v1309_v1 = vadd.f32 %v1308_v58, %v5755_v29  ;;  %v1501_v7 = vmax.f32 %v1234_v50, 0.0  ;;  %v1503_v8 = vmax.f32 %v1307_v51, 0.0 }
 0x2bc   : > { %v1239_v2 = vpop.f32.mrf.mxu0  ;;  %v1312_v4 = vpop.f32.mrf.mxu1  ;;  %v1555_v32 = vmax.f32 %v1554_v9, %v1494_v5  ;;  %v1581_v33 = vmax.f32 %v1580_v10, %v1496_v6 }
 0x2bd   : > { %v1240_v11 = vadd.f32 %v1239_v2, %v5741_v24  ;;  %v1313_v12 = vadd.f32 %v1312_v4, %v5746_v25  ;;  %v1502_v26 = vmax.f32 %v1236_v59, 0.0  ;;  %v1504_v27 = vmax.f32 %v1309_v1, 0.0 }
 0x2be   : > { %v1241_v14 = vpop.f32.mrf.mxu0  ;;  %v1314_v15 = vpop.f32.mrf.mxu1  ;;  %v1543_v47 = vmax.f32 %v1542_v18, %v1501_v7  ;;  %v1569_v34 = vmax.f32 %v1568_v19, %v1503_v8 }
 0x2bf   : > { %v1242_v3 = vadd.f32 %v1241_v14, %v5750_v28  ;;  %v1315_v23 = vadd.f32 %v1314_v15, %v5755_v29  ;;  %v1509_v35 = vmax.f32 %v1240_v11, 0.0  ;;  %v1511_v36 = vmax.f32 %v1313_v12, 0.0 }
 0x2c0   : > { %v1243_v30 = vpop.f32.mrf.mxu0  ;;  %v1316_v31 = vpop.f32.mrf.mxu1  ;;  %v1556_v45 = vmax.f32 %v1555_v32, %v1502_v26  ;;  %v1582_v46 = vmax.f32 %v1581_v33, %v1504_v27 }
 0x2c1   : > { %v1244_v37 = vadd.f32 %v1243_v30, %v5741_v24  ;;  %v1317_v38 = vadd.f32 %v1316_v31, %v5746_v25  ;;  %v1510_v41 = vmax.f32 %v1242_v3, 0.0  ;;  %v1512_v42 = vmax.f32 %v1315_v23, 0.0 }
 0x2c2   : > { %v1245_v39 = vpop.f32.mrf.mxu0  ;;  %v1318_v40 = vpop.f32.mrf.mxu1  ;;  %v1544_v57 = vmax.f32 %v1543_v47, %v1509_v35  ;;  %v1570_v58 = vmax.f32 %v1569_v34, %v1511_v36 }
 0x2c3   : > { %v1246_v43 = vadd.f32 %v1245_v39, %v5750_v28  ;;  %v1319_v44 = vadd.f32 %v1318_v40, %v5755_v29  ;;  %v1517_v48 = vmax.f32 %v1244_v37, 0.0  ;;  %v1519_v49 = vmax.f32 %v1317_v38, 0.0 }
 0x2c4   : > { %v1249_v50 = vpop.f32.mrf.mxu0  ;;  %v1322_v51 = vpop.f32.mrf.mxu1  ;;  %v1557_v62 = vmax.f32 %v1556_v45, %v1510_v41  ;;  %v1583_v63 = vmax.f32 %v1582_v46, %v1512_v42 }
 0x2c5   : > { %v1518_v52 = vmax.f32 %v1246_v43, 0.0  ;;  %v1520_v54 = vmax.f32 %v1319_v44, 0.0  ;;  %v1250_v55 = vadd.f32 %v1249_v50, %v5741_v24  ;;  %v1323_v56 = vadd.f32 %v1322_v51, %v5746_v25 }
 0x2c6   : > { %v1251_v60 = vpop.f32.mrf.mxu0  ;;  %v1324_v61 = vpop.f32.mrf.mxu1  ;;  %v1545_v59 = vmax.f32 %v1544_v57, %v1517_v48  ;;  %v1571_v1 = vmax.f32 %v1570_v58, %v1519_v49  ;;  %v847_v48 = vsub.s32 5, %v5724_v13  ;;  %v855_v49 = vsub.s32 7, %v5724_v13 }
 0x2c7   : > { %v1525_v0 = vmax.f32 %v1250_v55, 0.0  ;;  %v1527_v53 = vmax.f32 %v1323_v56, 0.0  ;;  %v1252_v2 = vadd.f32 %v1251_v60, %v5750_v28  ;;  %v1325_v4 = vadd.f32 %v1324_v61, %v5755_v29 }
 0x2c8   : > { %v1253_v5 = vpop.f32.mrf.mxu0  ;;  %v1326_v6 = vpop.f32.mrf.mxu1  ;;  %v1558_v7 = vmax.f32 %v1557_v62, %v1518_v52  ;;  %v1584_v8 = vmax.f32 %v1583_v63, %v1520_v54  ;;  %v5804_v60 = vrot.slane %v5733_v20, %v847_v48  ;;  %v5807_v61 = vrot.slane %v5733_v20, %v855_v49 }
 0x2c9   : > { %v1254_v9 = vadd.f32 %v1253_v5, %v5741_v24  ;;  %v1327_v10 = vadd.f32 %v1326_v6, %v5746_v25  ;;  %v1546_v11 = vmax.f32 %v1545_v59, %v1525_v0  ;;  %v1572_v12 = vmax.f32 %v1571_v1, %v1527_v53 }
 0x2ca   : > { %v1526_v14 = vmax.f32 %v1252_v2, 0.0  ;;  %v1528_v15 = vmax.f32 %v1325_v4, 0.0  ;;  %v1255_v18 = vpop.f32.mrf.mxu0  ;;  %v1328_v19 = vpop.f32.mrf.mxu1 }
 0x2cb   : > { %v1533_v3 = vmax.f32 %v1254_v9, 0.0  ;;  %v1535_v23 = vmax.f32 %v1327_v10, 0.0  ;;  %v1256_v26 = vadd.f32 %v1255_v18, %v5750_v28  ;;  %v1329_v27 = vadd.f32 %v1328_v19, %v5755_v29 }
 0x2cc   : > { %v1559_v30 = vmax.f32 %v1558_v7, %v1526_v14  ;;  %v1585_v31 = vmax.f32 %v1584_v8, %v1528_v15  ;;  %v5789_v32 = vpop.f32.mrf.mxu0  ;;  %v5791_v33 = vpop.f32.mrf.mxu1 }
 0x2cd   : > { %v1547_v24 = vmax.f32 %v1546_v11, %v1533_v3  ;;  %v1573_v25 = vmax.f32 %v1572_v12, %v1535_v23  ;;  %v1534_v47 = vmax.f32 %v1256_v26, 0.0  ;;  %v1536_v34 = vmax.f32 %v1329_v27, 0.0 }
 0x2ce   : > { %v1367_v35 = vpop.f32.mrf.mxu0  ;;  %v1440_v36 = vpop.f32.mrf.mxu1 }
 0x2cf   : > { %v1548_v37 = vrot.slane %v1547_v24, 4  ;;  %v1574_v38 = vrot.slane %v1573_v25, 4  ;;  %v1560_v39 = vmax.f32 %v1559_v30, %v1534_v47  ;;  %v1586_v40 = vmax.f32 %v1585_v31, %v1536_v34 }
 0x2d0   : > { %v5793_v41 = vpop.f32.mrf.mxu0  ;;  %v5795_v28 = vpop.f32.mrf.mxu1  ;;  %v1368_v5 = vadd.f32 %v1367_v35, %v5804_v60  ;;  %v1441_v8 = vadd.f32 %v1440_v36, %v5807_v61 }
 0x2d1   : > { %v1549_v29 = vmax.f32 %v1547_v24, %v1548_v37  ;;  %v1575_v42 = vmax.f32 %v1573_v25, %v1574_v38  ;;  %v1561_v43 = vrot.slane %v1560_v39, 4  ;;  %v1587_v44 = vrot.slane %v1586_v40, 4 }
 0x2d2   : > { %v1371_v45 = vpop.f32.mrf.mxu0  ;;  %v1444_v46 = vpop.f32.mrf.mxu1  ;;  %v1482_v26 = vmax.f32 %v1368_v5, 0.0  ;;  %v1484_v24 = vmax.f32 %v1441_v8, 0.0  ;;  %v4958_v8 = vld [vmem:[#allocation4 + $0x6c4] ss:$16 sps:$4 sm:$0xff]  }
 0x2d3   : > { %v1550_v52 = vrot.slane %v1549_v29, 2  ;;  %v1576_v54 = vrot.slane %v1575_v42, 2  ;;  %v1562_v55 = vmax.f32 %v1560_v39, %v1561_v43  ;;  %v1588_v56 = vmax.f32 %v1586_v40, %v1587_v44 }
 0x2d4   : > { %v5799_v50 = vpop.f32.mrf.mxu0  ;;  %v5801_v51 = vpop.f32.mrf.mxu1  ;;  %v1372_v6 = vadd.f32 %v1371_v45, %v5804_v60  ;;  %v1445_v7 = vadd.f32 %v1444_v46, %v5807_v61 }
 0x2d5   : > { %v1551_v0 = vmax.f32 %v1549_v29, %v1550_v52  ;;  %v1577_v53 = vmax.f32 %v1575_v42, %v1576_v54  ;;  %v1563_v59 = vrot.slane %v1562_v55, 2  ;;  %v1589_v1 = vrot.slane %v1588_v56, 2 }
 0x2d6   : > { %v1377_v57 = vpop.f32.mrf.mxu0  ;;  %v1450_v58 = vpop.f32.mrf.mxu1  ;;  %v1490_v27 = vmax.f32 %v1372_v6, 0.0  ;;  %v1492_v30 = vmax.f32 %v1445_v7, 0.0  ;;  %v4955_v7 = vld [vmem:[#allocation4 + $0x4c4] ss:$16 sps:$4 sm:$0xff]  }
 0x2d7   : > { %v1552_v11 = vrot.slane %v1551_v0, 1  ;;  %v1578_v12 = vrot.slane %v1577_v53, 1  ;;  %v1378_v14 = vadd.f32 %v1377_v57, %v5804_v60  ;;  %v1451_v15 = vadd.f32 %v1450_v58, %v5807_v61  ;;  %v4947_v58 = vld [vmem:[#allocation4 + $0x4e0] ss:$16 sps:$4 sm:$0xff]  }
 0x2d8   : > { %v5809_v62 = vpop.f32.mrf.mxu0  ;;  %v5811_v63 = vpop.f32.mrf.mxu1  ;;  %v1564_v3 = vmax.f32 %v1562_v55, %v1563_v59  ;;  %v1590_v23 = vmax.f32 %v1588_v56, %v1589_v1  ;;  %v1606_v48 = vmax.f32 %v1482_v26, %v1490_v27  ;;  %v1632_v49 = vmax.f32 %v1484_v24, %v1492_v30  ;;  %v4953_v26 = vld [vmem:[#allocation4 + $0x4c0] ss:$16 sps:$4 sm:$0xff]  }
 0x2d9   : > { %v1553_v37 = vmax.f32 %v1551_v0, %v1552_v11  ;;  %v1579_v38 = vmax.f32 %v1577_v53, %v1578_v12  ;;  %v1498_v39 = vmax.f32 %v1378_v14, 0.0  ;;  %v1500_v29 = vmax.f32 %v1451_v15, 0.0  ;;  %v4950_v0 = vld [vmem:[#allocation4 + $0x6e0] ss:$16 sps:$4 sm:$0xff]  }
 0x2da   : > { %v1381_v2 = vpop.f32.mrf.mxu0  ;;  %v1454_v4 = vpop.f32.mrf.mxu1  ;;  %v1565_v47 = vrot.slane %v1564_v3, 1  ;;  %v1591_v34 = vrot.slane %v1590_v23, 1  ;;  %v4956_v27 = vld [vmem:[#allocation4 + $0x6c0] ss:$16 sps:$4 sm:$0xff]  }
 0x2db   : > { %v1382_v31 = vadd.f32 %v1381_v2, %v5804_v60  ;;  %v1455_v25 = vadd.f32 %v1454_v4, %v5807_v61  ;;  %v5841_v2 = vpack.c.bf16 %v1553_v37, %v1553_v37  ;;  %v5843_v4 = vpack.c.bf16 %v1579_v38, %v1579_v38  ;;  %v4964_v37 = vld [vmem:[#allocation4 + $0x6a4] ss:$16 sps:$4 sm:$0xff]  }
 0x2dc   : > { %v5817_v9 = vpop.f32.mrf.mxu0  ;;  %v5819_v10 = vpop.f32.mrf.mxu1  ;;  %v1566_v43 = vmax.f32 %v1564_v3, %v1565_v47  ;;  %v1592_v44 = vmax.f32 %v1590_v23, %v1591_v34  ;;  %v1607_v5 = vmax.f32 %v1606_v48, %v1498_v39  ;;  %v1633_v11 = vmax.f32 %v1632_v49, %v1500_v29  ;;  %v4961_v34 = vld [vmem:[#allocation4 + $0x4a4] ss:$16 sps:$4 sm:$0xff]   ;;  %v4962_v48 = vld [vmem:[#allocation4 + $0x6a0] ss:$16 sps:$4 sm:$0xff]  }
 0x2dd   : > { %v1506_v52 = vmax.f32 %v1382_v31, 0.0  ;;  %v1508_v55 = vmax.f32 %v1455_v25, 0.0 }
 0x2de   : > { %v1387_v18 = vpop.f32.mrf.mxu0  ;;  %v1460_v19 = vpop.f32.mrf.mxu1  ;;  %v5832_v56 = vpack.c.bf16 %v1566_v43, %v1566_v43  ;;  %v5834_v57 = vpack.c.bf16 %v1592_v44, %v1592_v44 }
 0x2df   : > { %v1388_v40 = vadd.f32 %v1387_v18, %v5804_v60  ;;  %v1461_v42 = vadd.f32 %v1460_v19, %v5807_v61  ;;  %v1608_v18 = vmax.f32 %v1607_v5, %v1506_v52  ;;  %v1634_v3 = vmax.f32 %v1633_v11, %v1508_v55  ;;  %v4968_v11 = vld [vmem:[#allocation4 + $0x680] ss:$16 sps:$4 sm:$0xff]  }
 0x2e0   : > { %v5825_v35 = vpop.f32.mrf.mxu0  ;;  %v5827_v36 = vpop.f32.mrf.mxu1  ;;  %3243 = vmatprep.mubr.bf16.mxu0 %v5832_v56  ;;  %3284 = vmatprep.mubr.bf16.mxu1 %v5834_v57  ;;  %v843_v52 = vsub.s32 4, %v5724_v13 }
 0x2e1   : > { %v1514_v6 = vmax.f32 %v1388_v40, 0.0  ;;  %v1516_v12 = vmax.f32 %v1461_v42, 0.0  ;;  %3244 = vmatmul.mubr.bf16.vlgmr.msra.gmra.mxu0 %v5841_v2  ;;  %3285 = vmatmul.mubr.bf16.vlgmr.msra.gmra.mxu1 %v5843_v4 }
 0x2e2   : > { %v1391_v45 = vpop.f32.mrf.mxu0  ;;  %v1464_v46 = vpop.f32.mrf.mxu1  ;;  %3294 = vmatpush1.bf16.msra.mxu0 %v4947_v58  ;;  %3335 = vmatpush1.bf16.msra.mxu1 %v4950_v0  ;;  %v4967_v58 = vld [vmem:[#allocation4 + $0x484] ss:$16 sps:$4 sm:$0xff]  }
 0x2e3   : > { %v1392_v54 = vadd.f32 %v1391_v45, %v5804_v60  ;;  %v1465_v53 = vadd.f32 %v1464_v46, %v5807_v61  ;;  %v1609_v25 = vmax.f32 %v1608_v18, %v1514_v6  ;;  %3295 = vmatprep.subr.bf16.mxu0 %v4955_v7  ;;  %3336 = vmatprep.subr.bf16.mxu1 %v4958_v8  ;;  %v4959_v46 = vld [vmem:[#allocation4 + $0x4a0] ss:$16 sps:$4 sm:$0xff]   ;;  %v4970_v0 = vld [vmem:[#allocation4 + $0x684] ss:$16 sps:$4 sm:$0xff]  }
 0x2e4   : > { %v5837_v59 = vpop.f32.mrf.mxu0  ;;  %v5839_v1 = vpop.f32.mrf.mxu1  ;;  %v1635_v38 = vmax.f32 %v1634_v3, %v1516_v12  ;;  %v4965_v8 = vld [vmem:[#allocation4 + $0x480] ss:$16 sps:$4 sm:$0xff]  }
 0x2e5   : > { %v1522_v19 = vmax.f32 %v1392_v54, 0.0  ;;  %v1524_v23 = vmax.f32 %v1465_v53, 0.0  ;;  %v851_v53 = vsub.s32 6, %v5724_v13 }
 0x2e6   : > { %v1397_v14 = vpop.f32.mrf.mxu0  ;;  %v1470_v15 = vpop.f32.mrf.mxu1  ;;  %3296 = vmatpush1.bf16.msra.mxu0 %v4953_v26  ;;  %3337 = vmatpush1.bf16.msra.mxu1 %v4956_v27 }
 0x2e7   : > { %v1398_v30 = vadd.f32 %v1397_v14, %v5804_v60  ;;  %v1471_v47 = vadd.f32 %v1470_v15, %v5807_v61  ;;  %v1610_v42 = vmax.f32 %v1609_v25, %v1522_v19  ;;  %v1636_v45 = vmax.f32 %v1635_v38, %v1524_v23  ;;  %3297 = vmatprep.subr.bf16.mxu0 %v4961_v34  ;;  %v4973_v14 = vld [vmem:[#allocation4 + $0x464] ss:$16 sps:$4 sm:$0xff]   ;;  %v4974_v25 = vld [vmem:[#allocation4 + $0x660] ss:$16 sps:$4 sm:$0xff]  }
 0x2e8   : > { %v5850_v31 = vpop.f32.mrf.mxu0  ;;  %v5852_v24 = vpop.f32.mrf.mxu1  ;;  %3338 = vmatprep.subr.bf16.mxu1 %v4964_v37  ;;  %v4976_v15 = vld [vmem:[#allocation4 + $0x664] ss:$16 sps:$4 sm:$0xff]   ;;  %v5863_v18 = vrot.slane %v5733_v20, %v851_v53 }
 0x2e9   : > { %v1530_v39 = vmax.f32 %v1398_v30, 0.0  ;;  %v1532_v43 = vmax.f32 %v1471_v47, 0.0  ;;  %v4971_v30 = vld [vmem:[#allocation4 + $0x460] ss:$16 sps:$4 sm:$0xff]   ;;  %v4982_v37 = vld [vmem:[#allocation4 + $0x644] ss:$16 sps:$4 sm:$0xff]  }
 0x2ea   : > { %v1401_v40 = vpop.f32.mrf.mxu0  ;;  %v1474_v29 = vpop.f32.mrf.mxu1  ;;  %3298 = vmatpush1.bf16.msra.mxu0 %v4959_v46  ;;  %3339 = vmatpush1.bf16.msra.mxu1 %v4962_v48  ;;  %v1443_v26 = vadd.f32 %v5795_v28, %v5863_v18  ;;  %v1449_v28 = vadd.f32 %v5801_v51, %v5863_v18  ;;  %v4988_v51 = vld [vmem:[#allocation4 + $0x624] ss:$16 sps:$4 sm:$0xff]  }
 0x2eb   : > { %v1402_v44 = vadd.f32 %v1401_v40, %v5804_v60  ;;  %v1475_v49 = vadd.f32 %v1474_v29, %v5807_v61  ;;  %v1611_v54 = vmax.f32 %v1610_v42, %v1530_v39  ;;  %v1637_v5 = vmax.f32 %v1636_v45, %v1532_v43  ;;  %3299 = vmatprep.subr.bf16.mxu0 %v4967_v58 }
 0x2ec   : > { %v5860_v61 = vrot.slane %v5733_v20, %v843_v52  ;;  %3340 = vmatprep.subr.bf16.mxu1 %v4970_v0  ;;  %v4979_v20 = vld [vmem:[#allocation4 + $0x444] ss:$16 sps:$4 sm:$0xff]   ;;  %v1491_v42 = vmax.f32 %v1443_v26, 0.0  ;;  %v1453_v43 = vadd.f32 %v5811_v63, %v5863_v18  ;;  %v1459_v63 = vadd.f32 %v5819_v10, %v5863_v18 }
 0x2ed   : > { %v1538_v55 = vmax.f32 %v1402_v44, 0.0  ;;  %v1540_v6 = vmax.f32 %v1475_v49, 0.0  ;;  %v4977_v44 = vld [vmem:[#allocation4 + $0x440] ss:$16 sps:$4 sm:$0xff]  }
 0x2ee   : > { %v1370_v3 = vadd.f32 %v5793_v41, %v5860_v61  ;;  %3300 = vmatpush1.bf16.msra.mxu0 %v4965_v8  ;;  %3341 = vmatpush1.bf16.msra.mxu1 %v4968_v11  ;;  %v1366_v47 = vadd.f32 %v5789_v32, %v5860_v61  ;;  %v1439_v41 = vadd.f32 %v5791_v33, %v5863_v18  ;;  %v4980_v33 = vld [vmem:[#allocation4 + $0x640] ss:$16 sps:$4 sm:$0xff]   ;;  %v1515_v26 = vmax.f32 %v1459_v63, 0.0  ;;  %v5018_v63 = vld [vmem:[#allocation4 + $0x784] ss:$16 sps:$4 sm:$0xff]  }
 0x2ef   : > { %v1612_v60 = vmax.f32 %v1611_v54, %v1538_v55  ;;  %v1638_v7 = vmax.f32 %v1637_v5, %v1540_v6  ;;  %3301 = vmatprep.subr.bf16.mxu0 %v4973_v14  ;;  %3342 = vmatprep.subr.bf16.mxu1 %v4976_v15  ;;  %v1376_v38 = vadd.f32 %v5799_v50, %v5860_v61  ;;  %v4985_v50 = vld [vmem:[#allocation4 + $0x424] ss:$16 sps:$4 sm:$0xff]   ;;  %v1499_v54 = vmax.f32 %v1449_v28, 0.0 }
 0x2f0   : > { %v1489_v40 = vmax.f32 %v1370_v3, 0.0  ;;  %v1380_v32 = vadd.f32 %v5809_v62, %v5860_v61  ;;  %v1481_v46 = vmax.f32 %v1366_v47, 0.0  ;;  %v1483_v49 = vmax.f32 %v1439_v41, 0.0  ;;  %v4994_v14 = vld [vmem:[#allocation4 + $0x604] ss:$16 sps:$4 sm:$0xff]  }
 0x2f1   : > { %v1613_v12 = vrot.slane %v1612_v60, 4  ;;  %v1639_v19 = vrot.slane %v1638_v7, 4  ;;  %v1497_v52 = vmax.f32 %v1376_v38, 0.0  ;;  %v1386_v62 = vadd.f32 %v5817_v9, %v5860_v61  ;;  %v4991_v9 = vld [vmem:[#allocation4 + $0x404] ss:$16 sps:$4 sm:$0xff]  }
 0x2f2   : > { %3302 = vmatpush1.bf16.msra.mxu0 %v4971_v30  ;;  %3343 = vmatpush1.bf16.msra.mxu1 %v4974_v25  ;;  %v1593_v58 = vmax.f32 %v1481_v46, %v1489_v40  ;;  %v1619_v53 = vmax.f32 %v1483_v49, %v1491_v42  ;;  %v1505_v5 = vmax.f32 %v1380_v32, 0.0  ;;  %v1507_v6 = vmax.f32 %v1453_v43, 0.0  ;;  %v4989_v25 = vld [vmem:[#allocation4 + $0x400] ss:$16 sps:$4 sm:$0xff]   ;;  %v5012_v49 = vld [vmem:[#allocation4 + $0x7a4] ss:$16 sps:$4 sm:$0xff]  }
 0x2f3   : > { %v1614_v23 = vmax.f32 %v1612_v60, %v1613_v12  ;;  %v1640_v27 = vmax.f32 %v1638_v7, %v1639_v19  ;;  %3303 = vmatprep.subr.bf16.mxu0 %v4979_v20  ;;  %3344 = vmatprep.subr.bf16.mxu1 %v4982_v37  ;;  %v4983_v60 = vld [vmem:[#allocation4 + $0x420] ss:$16 sps:$4 sm:$0xff]   ;;  %v1390_v11 = vadd.f32 %v5825_v35, %v5860_v61 }
 0x2f4   : > { %v4986_v7 = vld [vmem:[#allocation4 + $0x620] ss:$16 sps:$4 sm:$0xff]   ;;  %v1463_v12 = vadd.f32 %v5827_v36, %v5863_v18  ;;  %v1594_v15 = vmax.f32 %v1593_v58, %v1497_v52  ;;  %v1620_v19 = vmax.f32 %v1619_v53, %v1499_v54  ;;  %v1469_v35 = vadd.f32 %v5839_v1, %v5863_v18  ;;  %v5000_v1 = vld [vmem:[#allocation4 + $0x7e4] ss:$16 sps:$4 sm:$0xff]  }
 0x2f5   : > { %v1615_v34 = vrot.slane %v1614_v23, 2  ;;  %v1641_v39 = vrot.slane %v1640_v27, 2  ;;  %v4992_v47 = vld [vmem:[#allocation4 + $0x600] ss:$16 sps:$4 sm:$0xff]   ;;  %v1400_v37 = vadd.f32 %v5850_v31, %v5860_v61  ;;  %v1473_v41 = vadd.f32 %v5852_v24, %v5863_v18  ;;  %v5003_v24 = vld [vmem:[#allocation4 + $0x5c4] ss:$16 sps:$4 sm:$0xff]  }
 0x2f6   : > { %3304 = vmatpush1.bf16.msra.mxu0 %v4977_v44  ;;  %3345 = vmatpush1.bf16.msra.mxu1 %v4980_v33  ;;  %v1595_v36 = vmax.f32 %v1594_v15, %v1505_v5  ;;  %v1621_v30 = vmax.f32 %v1620_v19, %v1507_v6  ;;  %v1523_v20 = vmax.f32 %v1463_v12, 0.0  ;;  %v1531_v40 = vmax.f32 %v1469_v35, 0.0  ;;  %v4998_v42 = vld [vmem:[#allocation4 + $0x7e0] ss:$16 sps:$4 sm:$0xff]   ;;  %v5006_v18 = vld [vmem:[#allocation4 + $0x7c4] ss:$16 sps:$4 sm:$0xff]  }
 0x2f7   : > { %v1616_v29 = vmax.f32 %v1614_v23, %v1615_v34  ;;  %v1642_v45 = vmax.f32 %v1640_v27, %v1641_v39  ;;  %3305 = vmatprep.subr.bf16.mxu0 %v4985_v50  ;;  %3346 = vmatprep.subr.bf16.mxu1 %v4988_v51  ;;  %v1513_v23 = vmax.f32 %v1386_v62, 0.0  ;;  %v1396_v27 = vadd.f32 %v5837_v59, %v5860_v61  ;;  %v4997_v59 = vld [vmem:[#allocation4 + $0x5e4] ss:$16 sps:$4 sm:$0xff]   ;;  %v5004_v46 = vld [vmem:[#allocation4 + $0x7c0] ss:$16 sps:$4 sm:$0xff]  }
 0x2f8   : > { %v1521_v34 = vmax.f32 %v1390_v11, 0.0  ;;  %v1622_v28 = vmax.f32 %v1621_v30, %v1515_v26  ;;  %v1537_v31 = vmax.f32 %v1400_v37, 0.0  ;;  %v1539_v61 = vmax.f32 %v1473_v41, 0.0  ;;  %v5007_v52 = vld [vmem:[#allocation4 + $0x5a0] ss:$16 sps:$4 sm:$0xff]  }
 0x2f9   : > { %v1617_v48 = vrot.slane %v1616_v29, 1  ;;  %v1643_v55 = vrot.slane %v1642_v45, 1  ;;  %v1596_v38 = vmax.f32 %v1595_v36, %v1513_v23  ;;  %v1529_v39 = vmax.f32 %v1396_v27, 0.0  ;;  %v5010_v54 = vld [vmem:[#allocation4 + $0x7a0] ss:$16 sps:$4 sm:$0xff]  }
 0x2fa   : > { %3306 = vmatpush1.bf16.msra.mxu0 %v4983_v60  ;;  %3347 = vmatpush1.bf16.msra.mxu1 %v4986_v7  ;;  %v1623_v43 = vmax.f32 %v1622_v28, %v1523_v20  ;;  %v5015_v62 = vld [vmem:[#allocation4 + $0x584] ss:$16 sps:$4 sm:$0xff]   ;;  %v5016_v53 = vld [vmem:[#allocation4 + $0x780] ss:$16 sps:$4 sm:$0xff]   ;;  %v5045_v28 = vld [vmem:[#allocation4 + $0xec] ss:$16 sps:$4 sm:$0xff]  }
 0x2fb   : > { %v1618_v0 = vmax.f32 %v1616_v29, %v1617_v48  ;;  %v1644_v8 = vmax.f32 %v1642_v45, %v1643_v55  ;;  %3307 = vmatprep.subr.bf16.mxu0 %v4991_v9  ;;  %3348 = vmatprep.subr.bf16.mxu1 %v4994_v14  ;;  %v4995_v29 = vld [vmem:[#allocation4 + $0x5e0] ss:$16 sps:$4 sm:$0xff]   ;;  %v1597_v32 = vmax.f32 %v1596_v38, %v1521_v34  ;;  %v5009_v48 = vld [vmem:[#allocation4 + $0x5a4] ss:$16 sps:$4 sm:$0xff]  }
 0x2fc   : > { %v1624_v33 = vmax.f32 %v1623_v43, %v1531_v40  ;;  %v5001_v45 = vld [vmem:[#allocation4 + $0x5c0] ss:$16 sps:$4 sm:$0xff]   ;;  %v5021_v60 = vld [vmem:[#allocation4 + $0x564] ss:$16 sps:$4 sm:$0xff]   ;;  %v5043_v40 = vld [vmem:[#allocation4 + $0xe8] ss:$16 sps:$4 sm:$0xff]  }
 0x2fd   : > { %v5889_v10 = vpack.c.bf16 %v1618_v0, %v1618_v0  ;;  %v5891_v3 = vpack.c.bf16 %v1644_v8, %v1644_v8  ;;  %v1598_v44 = vmax.f32 %v1597_v32, %v1529_v39  ;;  %v5013_v0 = vld [vmem:[#allocation4 + $0x580] ss:$16 sps:$4 sm:$0xff]   ;;  %v5024_v7 = vld [vmem:[#allocation4 + $0x764] ss:$16 sps:$4 sm:$0xff]   ;;  %v5048_v39 = vld [vmem:[#allocation4 + $0x2ec] ss:$16 sps:$4 sm:$0xff]  }
 0x2fe   : > { %3308 = vmatpush1.bf16.msra.mxu0 %v4989_v25  ;;  %3349 = vmatpush1.bf16.msra.mxu1 %v4992_v47  ;;  %v1625_v51 = vmax.f32 %v1624_v33, %v1539_v61  ;;  %v5019_v8 = vld [vmem:[#allocation4 + $0x560] ss:$16 sps:$4 sm:$0xff]   ;;  %v5027_v14 = vld [vmem:[#allocation4 + $0x544] ss:$16 sps:$4 sm:$0xff]   ;;  %v5046_v32 = vld [vmem:[#allocation4 + $0x2e8] ss:$16 sps:$4 sm:$0xff]  }
 0x2ff   : > { %3325 = vmatprep.mubr.bf16.mxu0 %v5889_v10  ;;  %3366 = vmatprep.mubr.bf16.mxu1 %v5891_v3  ;;  %v1599_v50 = vmax.f32 %v1598_v44, %v1537_v31  ;;  %v5022_v11 = vld [vmem:[#allocation4 + $0x760] ss:$16 sps:$4 sm:$0xff]   ;;  %v5030_v15 = vld [vmem:[#allocation4 + $0x744] ss:$16 sps:$4 sm:$0xff]   ;;  %v5051_v43 = vld [vmem:[#allocation4 + $0xcc] ss:$16 sps:$4 sm:$0xff]  }
 0x300   : > { %3309 = vmatprep.subr.bf16.mxu0 %v4997_v59  ;;  %3350 = vmatprep.subr.bf16.mxu1 %v5000_v1  ;;  %v1626_v58 = vrot.slane %v1625_v51, 4  ;;  %v5025_v19 = vld [vmem:[#allocation4 + $0x540] ss:$16 sps:$4 sm:$0xff]   ;;  %v5033_v35 = vld [vmem:[#allocation4 + $0x524] ss:$16 sps:$4 sm:$0xff]  }
 0x301   : > { %v1600_v55 = vrot.slane %v1599_v50, 4  ;;  %v5028_v23 = vld [vmem:[#allocation4 + $0x740] ss:$16 sps:$4 sm:$0xff]   ;;  %v5036_v36 = vld [vmem:[#allocation4 + $0x724] ss:$16 sps:$4 sm:$0xff]  }
 0x302   : > { %3310 = vmatpush2.bf16.msra.mxu0 %v4995_v29  ;;  %3351 = vmatpush2.bf16.msra.mxu1 %v4998_v42  ;;  %v1627_v6 = vmax.f32 %v1625_v51, %v1626_v58  ;;  %v5031_v30 = vld [vmem:[#allocation4 + $0x520] ss:$16 sps:$4 sm:$0xff]   ;;  %v5039_v20 = vld [vmem:[#allocation4 + $0x504] ss:$16 sps:$4 sm:$0xff]   ;;  %v5054_v31 = vld [vmem:[#allocation4 + $0x2cc] ss:$16 sps:$4 sm:$0xff]  }
 0x303   : > { %3311 = vmatprep.subr.bf16.mxu0 %v5003_v24  ;;  %3352 = vmatprep.subr.bf16.mxu1 %v5006_v18  ;;  %v1601_v5 = vmax.f32 %v1599_v50, %v1600_v55  ;;  %v5034_v25 = vld [vmem:[#allocation4 + $0x720] ss:$16 sps:$4 sm:$0xff]   ;;  %v5042_v37 = vld [vmem:[#allocation4 + $0x704] ss:$16 sps:$4 sm:$0xff]   ;;  %v5049_v61 = vld [vmem:[#allocation4 + $0xc8] ss:$16 sps:$4 sm:$0xff]  }
 0x304   : > { %v1628_v9 = vrot.slane %v1627_v6, 2  ;;  %v5037_v41 = vld [vmem:[#allocation4 + $0x500] ss:$16 sps:$4 sm:$0xff]   ;;  %v5052_v24 = vld [vmem:[#allocation4 + $0x2c8] ss:$16 sps:$4 sm:$0xff]  }
 0x305   : > { %v1602_v12 = vrot.slane %v1601_v5, 2  ;;  %v5040_v59 = vld [vmem:[#allocation4 + $0x700] ss:$16 sps:$4 sm:$0xff]   ;;  %v5057_v18 = vld [vmem:[#allocation4 + $0xac] ss:$16 sps:$4 sm:$0xff]  }
 0x306   : > { %3312 = vmatpush2.bf16.msra.mxu0 %v5001_v45  ;;  %3353 = vmatpush2.bf16.msra.mxu1 %v5004_v46  ;;  %v1629_v27 = vmax.f32 %v1627_v6, %v1628_v9  ;;  %v5060_v44 = vld [vmem:[#allocation4 + $0x2ac] ss:$16 sps:$4 sm:$0xff]   ;;  %v5055_v33 = vld [vmem:[#allocation4 + $0xa8] ss:$16 sps:$4 sm:$0xff]  }
 0x307   : > { %3313 = vmatprep.subr.bf16.mxu0 %v5009_v48  ;;  %3354 = vmatprep.subr.bf16.mxu1 %v5012_v49  ;;  %v1603_v26 = vmax.f32 %v1601_v5, %v1602_v12  ;;  %v5058_v45 = vld [vmem:[#allocation4 + $0x2a8] ss:$16 sps:$4 sm:$0xff]   ;;  %v5063_v46 = vld [vmem:[#allocation4 + $0x8c] ss:$16 sps:$4 sm:$0xff]  }
 0x308   : > { %v1630_v34 = vrot.slane %v1629_v27, 1  ;;  %v5066_v50 = vld [vmem:[#allocation4 + $0x28c] ss:$16 sps:$4 sm:$0xff]   ;;  %v5061_v51 = vld [vmem:[#allocation4 + $0x88] ss:$16 sps:$4 sm:$0xff]  }
 0x309   : > { %v1604_v47 = vrot.slane %v1603_v26, 1  ;;  %v5069_v48 = vld [vmem:[#allocation4 + $0x6c] ss:$16 sps:$4 sm:$0xff]   ;;  %v5067_v49 = vld [vmem:[#allocation4 + $0x68] ss:$16 sps:$4 sm:$0xff]  }
 0x30a   : > { %3314 = vmatpush2.bf16.msra.mxu0 %v5007_v52  ;;  %3355 = vmatpush2.bf16.msra.mxu1 %v5010_v54  ;;  %v1631_v38 = vmax.f32 %v1629_v27, %v1630_v34  ;;  %v5070_v52 = vld [vmem:[#allocation4 + $0x268] ss:$16 sps:$4 sm:$0xff]   ;;  %v5075_v54 = vld [vmem:[#allocation4 + $0x4c] ss:$16 sps:$4 sm:$0xff]  }
 0x30b   : > { %3315 = vmatprep.subr.bf16.mxu0 %v5015_v62  ;;  %3356 = vmatprep.subr.bf16.mxu1 %v5018_v63  ;;  %v1605_v1 = vmax.f32 %v1603_v26, %v1604_v47  ;;  %v5078_v55 = vld [vmem:[#allocation4 + $0x24c] ss:$16 sps:$4 sm:$0xff]   ;;  %v5073_v58 = vld [vmem:[#allocation4 + $0x48] ss:$16 sps:$4 sm:$0xff]  }
 0x30c   : > { %v5905_v42 = vpack.c.bf16 %v1631_v38, %v1631_v38  ;;  %v5076_v62 = vld [vmem:[#allocation4 + $0x248] ss:$16 sps:$4 sm:$0xff]   ;;  %v5081_v63 = vld [vmem:[#allocation4 + $0x2c] ss:$16 sps:$4 sm:$0xff]  }
 0x30d   : > { %v5903_v29 = vpack.c.bf16 %v1605_v1, %v1605_v1  ;;  %v5082_v5 = vld [vmem:[#allocation4 + $0x228] ss:$16 sps:$4 sm:$0xff]   ;;  %v5087_v6 = vld [vmem:[#allocation4 + $0xc] ss:$16 sps:$4 sm:$0xff]  }
 0x30e   : > { %3316 = vmatpush2.bf16.msra.mxu0 %v5013_v0  ;;  %3357 = vmatpush2.bf16.msra.mxu1 %v5016_v53  ;;  %v5084_v0 = vld [vmem:[#allocation4 + $0x22c] ss:$16 sps:$4 sm:$0xff]   ;;  %v5079_v53 = vld [vmem:[#allocation4 + $0x28] ss:$16 sps:$4 sm:$0xff]  }
 0x30f   : > { %3317 = vmatprep.subr.bf16.mxu0 %v5021_v60  ;;  %3358 = vmatprep.subr.bf16.mxu1 %v5024_v7  ;;  %v5090_v60 = vld [vmem:[#allocation4 + $0x20c] ss:$16 sps:$4 sm:$0xff]   ;;  %v5085_v7 = vld [vmem:[#allocation4 + $0x8] ss:$16 sps:$4 sm:$0xff]  }
 0x310   : > { %v5096_v12 = vld [vmem:[#allocation4 + $0x3ec] ss:$16 sps:$4 sm:$0xff]   ;;  %v5091_v9 = vld [vmem:[#allocation4 + $0x1e8] ss:$16 sps:$4 sm:$0xff]  }
 0x311   : > { %v5100_v26 = vld [vmem:[#allocation4 + $0x3c8] ss:$16 sps:$4 sm:$0xff]   ;;  %v5105_v27 = vld [vmem:[#allocation4 + $0x1ac] ss:$16 sps:$4 sm:$0xff]  }
 0x312   : > { %3318 = vmatpush2.bf16.msra.mxu0 %v5019_v8  ;;  %3359 = vmatpush2.bf16.msra.mxu1 %v5022_v11  ;;  %v5088_v8 = vld [vmem:[#allocation4 + $0x208] ss:$16 sps:$4 sm:$0xff]   ;;  %v5093_v11 = vld [vmem:[#allocation4 + $0x1ec] ss:$16 sps:$4 sm:$0xff]  }
 0x313   : > { %3319 = vmatprep.subr.bf16.mxu0 %v5027_v14  ;;  %3360 = vmatprep.subr.bf16.mxu1 %v5030_v15  ;;  %v5094_v14 = vld [vmem:[#allocation4 + $0x3e8] ss:$16 sps:$4 sm:$0xff]   ;;  %v5099_v15 = vld [vmem:[#allocation4 + $0x1cc] ss:$16 sps:$4 sm:$0xff]  }
 0x314   : > { %v5114_v47 = vld [vmem:[#allocation4 + $0x38c] ss:$16 sps:$4 sm:$0xff]   ;;  %v5109_v34 = vld [vmem:[#allocation4 + $0x188] ss:$16 sps:$4 sm:$0xff]  }
 0x315   : > { %v5118_v1 = vld [vmem:[#allocation4 + $0x368] ss:$16 sps:$4 sm:$0xff]   ;;  %v5123_v38 = vld [vmem:[#allocation4 + $0x14c] ss:$16 sps:$4 sm:$0xff]  }
 0x316   : > { %3320 = vmatpush2.bf16.msra.mxu0 %v5025_v19  ;;  %3361 = vmatpush2.bf16.msra.mxu1 %v5028_v23  ;;  %v5102_v19 = vld [vmem:[#allocation4 + $0x3cc] ss:$16 sps:$4 sm:$0xff]   ;;  %v5097_v23 = vld [vmem:[#allocation4 + $0x1c8] ss:$16 sps:$4 sm:$0xff]  }
 0x317   : > { %3321 = vmatprep.subr.bf16.mxu0 %v5033_v35  ;;  %3362 = vmatprep.subr.bf16.mxu1 %v5036_v36  ;;  %v5108_v35 = vld [vmem:[#allocation4 + $0x3ac] ss:$16 sps:$4 sm:$0xff]   ;;  %v5103_v36 = vld [vmem:[#allocation4 + $0x1a8] ss:$16 sps:$4 sm:$0xff]  }
 0x31a   : > { %3322 = vmatpush2.bf16.msra.mxu0 %v5031_v30  ;;  %3363 = vmatpush2.bf16.msra.mxu1 %v5034_v25  ;;  %v5106_v30 = vld [vmem:[#allocation4 + $0x3a8] ss:$16 sps:$4 sm:$0xff]   ;;  %v5111_v25 = vld [vmem:[#allocation4 + $0x18c] ss:$16 sps:$4 sm:$0xff]  }
 0x31b   : > { %3323 = vmatprep.subr.bf16.mxu0 %v5039_v20  ;;  %3364 = vmatprep.subr.bf16.mxu1 %v5042_v37  ;;  %v5112_v20 = vld [vmem:[#allocation4 + $0x388] ss:$16 sps:$4 sm:$0xff]   ;;  %v5117_v37 = vld [vmem:[#allocation4 + $0x16c] ss:$16 sps:$4 sm:$0xff]  }
 0x31e   : > { %3324 = vmatpush2.bf16.msra.mxu0 %v5037_v41  ;;  %3365 = vmatpush2.bf16.msra.mxu1 %v5040_v59  ;;  %v5120_v41 = vld [vmem:[#allocation4 + $0x36c] ss:$16 sps:$4 sm:$0xff]   ;;  %v5115_v59 = vld [vmem:[#allocation4 + $0x168] ss:$16 sps:$4 sm:$0xff]  }
 0x31f   : > { %3375 = vmatprep.subr.bf16.mxu0 %v5045_v28  ;;  %3416 = vmatprep.subr.bf16.mxu1 %v5048_v39  ;;  %v5126_v28 = vld [vmem:[#allocation4 + $0x34c] ss:$16 sps:$4 sm:$0xff]   ;;  %v5121_v39 = vld [vmem:[#allocation4 + $0x148] ss:$16 sps:$4 sm:$0xff]  }
 0x321   : > { %3326 = vmatmul.mubr.bf16.vlgmr.msra.gmra.mxu0 %v5903_v29  ;;  %3367 = vmatmul.mubr.bf16.vlgmr.msra.gmra.mxu1 %v5905_v42 }
 0x322   : > { %3376 = vmatpush1.bf16.msra.mxu0 %v5043_v40  ;;  %3407 = vmatprep.mubr.bf16.mxu0 %v5832_v56  ;;  %v5064_v56 = vld [vmem:[#allocation4 + $0x288] ss:$16 sps:$4 sm:$0xff]  }
 0x323   : > { %3417 = vmatpush1.bf16.msra.mxu1 %v5046_v32  ;;  %3448 = vmatprep.mubr.bf16.mxu1 %v5834_v57  ;;  %v5072_v57 = vld [vmem:[#allocation4 + $0x26c] ss:$16 sps:$4 sm:$0xff]   ;;  %v5124_v40 = vld [vmem:[#allocation4 + $0x348] ss:$16 sps:$4 sm:$0xff]  }
 0x324   : > { %3377 = vmatprep.subr.bf16.mxu0 %v5051_v43  ;;  %3418 = vmatprep.subr.bf16.mxu1 %v5054_v31  ;;  %v5129_v32 = vld [vmem:[#allocation4 + $0x12c] ss:$16 sps:$4 sm:$0xff]   ;;  %v5127_v31 = vld [vmem:[#allocation4 + $0x128] ss:$16 sps:$4 sm:$0xff]  }
 0x325   : > { %v5132_v43 = vld [vmem:[#allocation4 + $0x32c] ss:$16 sps:$4 sm:$0xff]  }
 0x326   : > { %3378 = vmatpush1.bf16.msra.mxu0 %v5049_v61  ;;  %v5130_v61 = vld [vmem:[#allocation4 + $0x328] ss:$16 sps:$4 sm:$0xff]  }
 0x327   : > { %3419 = vmatpush1.bf16.msra.mxu1 %v5052_v24  ;;  %3379 = vmatprep.subr.bf16.mxu0 %v5057_v18  ;;  %v5135_v24 = vld [vmem:[#allocation4 + $0x10c] ss:$16 sps:$4 sm:$0xff]  }
 0x328   : > { %3420 = vmatprep.subr.bf16.mxu1 %v5060_v44  ;;  %v5138_v18 = vld [vmem:[#allocation4 + $0x30c] ss:$16 sps:$4 sm:$0xff]   ;;  %v5133_v44 = vld [vmem:[#allocation4 + $0x108] ss:$16 sps:$4 sm:$0xff]  }
 0x32a   : > { %3380 = vmatpush1.bf16.msra.mxu0 %v5055_v33  ;;  %v5136_v33 = vld [vmem:[#allocation4 + $0x308] ss:$16 sps:$4 sm:$0xff]  }
 0x32b   : > { %3421 = vmatpush1.bf16.msra.mxu1 %v5058_v45  ;;  %3381 = vmatprep.subr.bf16.mxu0 %v5063_v46  ;;  %v5141_v45 = vld [vmem:[#allocation4 + $0x4ec] ss:$16 sps:$4 sm:$0xff]  }
 0x32c   : > { %3422 = vmatprep.subr.bf16.mxu1 %v5066_v50  ;;  %v5144_v46 = vld [vmem:[#allocation4 + $0x6ec] ss:$16 sps:$4 sm:$0xff]   ;;  %v5139_v50 = vld [vmem:[#allocation4 + $0x4e8] ss:$16 sps:$4 sm:$0xff]  }
 0x32e   : > { %3382 = vmatpush1.bf16.msra.mxu0 %v5061_v51  ;;  %v5142_v51 = vld [vmem:[#allocation4 + $0x6e8] ss:$16 sps:$4 sm:$0xff]  }
 0x32f   : > { %3423 = vmatpush1.bf16.msra.mxu1 %v5064_v56  ;;  %3383 = vmatprep.subr.bf16.mxu0 %v5069_v48  ;;  %v5147_v56 = vld [vmem:[#allocation4 + $0x4cc] ss:$16 sps:$4 sm:$0xff]  }
 0x330   : > { %3424 = vmatprep.subr.bf16.mxu1 %v5072_v57  ;;  %v5150_v48 = vld [vmem:[#allocation4 + $0x6cc] ss:$16 sps:$4 sm:$0xff]   ;;  %v5145_v57 = vld [vmem:[#allocation4 + $0x4c8] ss:$16 sps:$4 sm:$0xff]  }
 0x332   : > { %3384 = vmatpush1.bf16.msra.mxu0 %v5067_v49  ;;  %v5148_v49 = vld [vmem:[#allocation4 + $0x6c8] ss:$16 sps:$4 sm:$0xff]  }
 0x333   : > { %3425 = vmatpush1.bf16.msra.mxu1 %v5070_v52  ;;  %3385 = vmatprep.subr.bf16.mxu0 %v5075_v54  ;;  %v5153_v52 = vld [vmem:[#allocation4 + $0x4ac] ss:$16 sps:$4 sm:$0xff]  }
 0x334   : > { %3426 = vmatprep.subr.bf16.mxu1 %v5078_v55  ;;  %v5156_v54 = vld [vmem:[#allocation4 + $0x6ac] ss:$16 sps:$4 sm:$0xff]   ;;  %v5151_v55 = vld [vmem:[#allocation4 + $0x4a8] ss:$16 sps:$4 sm:$0xff]  }
 0x336   : > { %3386 = vmatpush1.bf16.msra.mxu0 %v5073_v58  ;;  %v5159_v58 = vld [vmem:[#allocation4 + $0x48c] ss:$16 sps:$4 sm:$0xff]  }
 0x337   : > { %3427 = vmatpush1.bf16.msra.mxu1 %v5076_v62  ;;  %3387 = vmatprep.subr.bf16.mxu0 %v5081_v63  ;;  %v5157_v62 = vld [vmem:[#allocation4 + $0x488] ss:$16 sps:$4 sm:$0xff]   ;;  %v5165_v63 = vld [vmem:[#allocation4 + $0x46c] ss:$16 sps:$4 sm:$0xff]  }
 0x338   : > { %3428 = vmatprep.subr.bf16.mxu1 %v5084_v0  ;;  %v5168_v0 = vld [vmem:[#allocation4 + $0x66c] ss:$16 sps:$4 sm:$0xff]  }
 0x33a   : > { %3388 = vmatpush1.bf16.msra.mxu0 %v5079_v53  ;;  %v5166_v53 = vld [vmem:[#allocation4 + $0x668] ss:$16 sps:$4 sm:$0xff]  }
 0x33b   : > { %3429 = vmatpush1.bf16.msra.mxu1 %v5082_v5  ;;  %3389 = vmatprep.subr.bf16.mxu0 %v5087_v6  ;;  %v5171_v5 = vld [vmem:[#allocation4 + $0x44c] ss:$16 sps:$4 sm:$0xff]  }
 0x33c   : > { %3430 = vmatprep.subr.bf16.mxu1 %v5090_v60  ;;  %v5174_v6 = vld [vmem:[#allocation4 + $0x64c] ss:$16 sps:$4 sm:$0xff]   ;;  %v5169_v60 = vld [vmem:[#allocation4 + $0x448] ss:$16 sps:$4 sm:$0xff]  }
 0x33e   : > { %3390 = vmatpush1.bf16.msra.mxu0 %v5085_v7  ;;  %v5172_v7 = vld [vmem:[#allocation4 + $0x648] ss:$16 sps:$4 sm:$0xff]  }
 0x33f   : > { %3431 = vmatpush1.bf16.msra.mxu1 %v5088_v8  ;;  %3391 = vmatprep.subr.bf16.mxu0 %v5093_v11  ;;  %v5177_v8 = vld [vmem:[#allocation4 + $0x42c] ss:$16 sps:$4 sm:$0xff]  }
 0x340   : > { %3432 = vmatprep.subr.bf16.mxu1 %v5096_v12  ;;  %v5180_v11 = vld [vmem:[#allocation4 + $0x62c] ss:$16 sps:$4 sm:$0xff]   ;;  %v5175_v12 = vld [vmem:[#allocation4 + $0x428] ss:$16 sps:$4 sm:$0xff]  }
 0x342   : > { %3392 = vmatpush2.bf16.msra.mxu0 %v5091_v9  ;;  %v5178_v9 = vld [vmem:[#allocation4 + $0x628] ss:$16 sps:$4 sm:$0xff]  }
 0x343   : > { %3433 = vmatpush2.bf16.msra.mxu1 %v5094_v14  ;;  %3393 = vmatprep.subr.bf16.mxu0 %v5099_v15  ;;  %v5183_v14 = vld [vmem:[#allocation4 + $0x40c] ss:$16 sps:$4 sm:$0xff]  }
 0x344   : > { %3434 = vmatprep.subr.bf16.mxu1 %v5102_v19  ;;  %v5186_v15 = vld [vmem:[#allocation4 + $0x60c] ss:$16 sps:$4 sm:$0xff]   ;;  %v5181_v19 = vld [vmem:[#allocation4 + $0x408] ss:$16 sps:$4 sm:$0xff]  }
 0x346   : > { %3394 = vmatpush2.bf16.msra.mxu0 %v5097_v23  ;;  %v5184_v23 = vld [vmem:[#allocation4 + $0x608] ss:$16 sps:$4 sm:$0xff]  }
 0x347   : > { %3435 = vmatpush2.bf16.msra.mxu1 %v5100_v26  ;;  %3395 = vmatprep.subr.bf16.mxu0 %v5105_v27  ;;  %v5189_v26 = vld [vmem:[#allocation4 + $0x5ec] ss:$16 sps:$4 sm:$0xff]  }
 0x348   : > { %3436 = vmatprep.subr.bf16.mxu1 %v5108_v35  ;;  %v5192_v27 = vld [vmem:[#allocation4 + $0x7ec] ss:$16 sps:$4 sm:$0xff]   ;;  %v5187_v35 = vld [vmem:[#allocation4 + $0x5e8] ss:$16 sps:$4 sm:$0xff]  }
 0x34a   : > { %3396 = vmatpush2.bf16.msra.mxu0 %v5103_v36  ;;  %v5190_v36 = vld [vmem:[#allocation4 + $0x7e8] ss:$16 sps:$4 sm:$0xff]  }
 0x34b   : > { %3437 = vmatpush2.bf16.msra.mxu1 %v5106_v30  ;;  %3397 = vmatprep.subr.bf16.mxu0 %v5111_v25  ;;  %v5195_v30 = vld [vmem:[#allocation4 + $0x5cc] ss:$16 sps:$4 sm:$0xff]  }
 0x34c   : > { %3438 = vmatprep.subr.bf16.mxu1 %v5114_v47  ;;  %v5198_v25 = vld [vmem:[#allocation4 + $0x7cc] ss:$16 sps:$4 sm:$0xff]   ;;  %v5193_v47 = vld [vmem:[#allocation4 + $0x5c8] ss:$16 sps:$4 sm:$0xff]  }
 0x34e   : > { %3398 = vmatpush2.bf16.msra.mxu0 %v5109_v34  ;;  %v5196_v34 = vld [vmem:[#allocation4 + $0x7c8] ss:$16 sps:$4 sm:$0xff]  }
 0x34f   : > { %3439 = vmatpush2.bf16.msra.mxu1 %v5112_v20  ;;  %3399 = vmatprep.subr.bf16.mxu0 %v5117_v37  ;;  %v5201_v20 = vld [vmem:[#allocation4 + $0x5ac] ss:$16 sps:$4 sm:$0xff]  }
 0x350   : > { %3440 = vmatprep.subr.bf16.mxu1 %v5120_v41  ;;  %v5204_v37 = vld [vmem:[#allocation4 + $0x7ac] ss:$16 sps:$4 sm:$0xff]   ;;  %v5199_v41 = vld [vmem:[#allocation4 + $0x5a8] ss:$16 sps:$4 sm:$0xff]  }
 0x352   : > { %3400 = vmatpush2.bf16.msra.mxu0 %v5115_v59  ;;  %v5202_v59 = vld [vmem:[#allocation4 + $0x7a8] ss:$16 sps:$4 sm:$0xff]  }
 0x353   : > { %3441 = vmatpush2.bf16.msra.mxu1 %v5118_v1  ;;  %3401 = vmatprep.subr.bf16.mxu0 %v5123_v38  ;;  %v5207_v1 = vld [vmem:[#allocation4 + $0x58c] ss:$16 sps:$4 sm:$0xff]  }
 0x354   : > { %3442 = vmatprep.subr.bf16.mxu1 %v5126_v28  ;;  %v5210_v38 = vld [vmem:[#allocation4 + $0x78c] ss:$16 sps:$4 sm:$0xff]   ;;  %v5205_v28 = vld [vmem:[#allocation4 + $0x588] ss:$16 sps:$4 sm:$0xff]  }
 0x356   : > { %3402 = vmatpush2.bf16.msra.mxu0 %v5121_v39  ;;  %v5208_v39 = vld [vmem:[#allocation4 + $0x788] ss:$16 sps:$4 sm:$0xff]  }
 0x357   : > { %3443 = vmatpush2.bf16.msra.mxu1 %v5124_v40  ;;  %3403 = vmatprep.subr.bf16.mxu0 %v5129_v32  ;;  %v5213_v40 = vld [vmem:[#allocation4 + $0x56c] ss:$16 sps:$4 sm:$0xff]  }
 0x358   : > { %3444 = vmatprep.subr.bf16.mxu1 %v5132_v43  ;;  %v5216_v32 = vld [vmem:[#allocation4 + $0x76c] ss:$16 sps:$4 sm:$0xff]   ;;  %v5211_v43 = vld [vmem:[#allocation4 + $0x568] ss:$16 sps:$4 sm:$0xff]  }
 0x35a   : > { %3404 = vmatpush2.bf16.msra.mxu0 %v5127_v31  ;;  %v5214_v31 = vld [vmem:[#allocation4 + $0x768] ss:$16 sps:$4 sm:$0xff]  }
 0x35b   : > { %3445 = vmatpush2.bf16.msra.mxu1 %v5130_v61  ;;  %3405 = vmatprep.subr.bf16.mxu0 %v5135_v24  ;;  %v5219_v61 = vld [vmem:[#allocation4 + $0x54c] ss:$16 sps:$4 sm:$0xff]  }
 0x35c   : > { %3446 = vmatprep.subr.bf16.mxu1 %v5138_v18  ;;  %v5222_v24 = vld [vmem:[#allocation4 + $0x74c] ss:$16 sps:$4 sm:$0xff]   ;;  %v5217_v18 = vld [vmem:[#allocation4 + $0x548] ss:$16 sps:$4 sm:$0xff]  }
 0x35e   : > { %3406 = vmatpush2.bf16.msra.mxu0 %v5133_v44  ;;  %v5220_v44 = vld [vmem:[#allocation4 + $0x748] ss:$16 sps:$4 sm:$0xff]  }
 0x35f   : > { %3447 = vmatpush2.bf16.msra.mxu1 %v5136_v33  ;;  %3457 = vmatprep.subr.bf16.mxu0 %v5141_v45  ;;  %v5225_v33 = vld [vmem:[#allocation4 + $0x52c] ss:$16 sps:$4 sm:$0xff]  }
 0x360   : > { %3498 = vmatprep.subr.bf16.mxu1 %v5144_v46  ;;  %v5228_v45 = vld [vmem:[#allocation4 + $0x72c] ss:$16 sps:$4 sm:$0xff]   ;;  %v5223_v46 = vld [vmem:[#allocation4 + $0x528] ss:$16 sps:$4 sm:$0xff]  }
 0x361   : > { %3408 = vmatmul.mubr.bf16.vlgmr.msra.gmra.mxu0 %v5841_v2  ;;  %v5154_v2 = vld [vmem:[#allocation4 + $0x6a8] ss:$16 sps:$4 sm:$0xff]  }
 0x362   : > { %3449 = vmatmul.mubr.bf16.vlgmr.msra.gmra.mxu1 %v5843_v4  ;;  %3458 = vmatpush1.bf16.msra.mxu0 %v5139_v50  ;;  %v5162_v4 = vld [vmem:[#allocation4 + $0x68c] ss:$16 sps:$4 sm:$0xff]   ;;  %v5226_v50 = vld [vmem:[#allocation4 + $0x728] ss:$16 sps:$4 sm:$0xff]  }
 0x363   : > { %3489 = vmatprep.mubr.bf16.mxu0 %v5889_v10  ;;  %3499 = vmatpush1.bf16.msra.mxu1 %v5142_v51  ;;  %v5160_v10 = vld [vmem:[#allocation4 + $0x688] ss:$16 sps:$4 sm:$0xff]   ;;  %v5231_v51 = vld [vmem:[#allocation4 + $0x50c] ss:$16 sps:$4 sm:$0xff]  }
 0x364   : > { %3530 = vmatprep.mubr.bf16.mxu1 %v5891_v3  ;;  %3459 = vmatprep.subr.bf16.mxu0 %v5147_v56  ;;  %v5163_v3 = vld [vmem:[#allocation4 + $0x468] ss:$16 sps:$4 sm:$0xff]   ;;  %v5234_v56 = vld [vmem:[#allocation4 + $0x70c] ss:$16 sps:$4 sm:$0xff]  }
 0x365   : > { %3500 = vmatprep.subr.bf16.mxu1 %v5150_v48  ;;  %v5229_v48 = vld [vmem:[#allocation4 + $0x508] ss:$16 sps:$4 sm:$0xff]  }
 0x366   : > { %3460 = vmatpush1.bf16.msra.mxu0 %v5145_v57  ;;  %v5232_v57 = vld [vmem:[#allocation4 + $0x708] ss:$16 sps:$4 sm:$0xff]  }
 0x367   : > { %3501 = vmatpush1.bf16.msra.mxu1 %v5148_v49  ;;  %3461 = vmatprep.subr.bf16.mxu0 %v5153_v52  ;;  %v5237_v49 = vld [vmem:[#allocation6 + $0x74] ss:$8 sps:$4 sm:$0xff]   ;;  %v5235_v52 = vld [vmem:[#allocation6 + $0x70] ss:$8 sps:$4 sm:$0xff]  }
 0x368   : > { %3502 = vmatprep.subr.bf16.mxu1 %v5156_v54  ;;  %v5240_v54 = vld [vmem:[#allocation6 + $0x64] ss:$8 sps:$4 sm:$0xff]  }
 0x36a   : > { %3462 = vmatpush1.bf16.msra.mxu0 %v5151_v55 }
 0x36b   : > { %3503 = vmatpush1.bf16.msra.mxu1 %v5154_v2  ;;  %3463 = vmatprep.subr.bf16.mxu0 %v5159_v58  ;;  %v5238_v58 = vld [vmem:[#allocation6 + $0x60] ss:$8 sps:$4 sm:$0xff]  }
 0x36c   : > { %3504 = vmatprep.subr.bf16.mxu1 %v5162_v4 }
 0x36e   : > { %3464 = vmatpush1.bf16.msra.mxu0 %v5157_v62 }
 0x36f   : > { %3505 = vmatpush1.bf16.msra.mxu1 %v5160_v10  ;;  %3465 = vmatprep.subr.bf16.mxu0 %v5165_v63  ;;  %v5243_v10 = vld [vmem:[#allocation6 + $0x54] ss:$8 sps:$4 sm:$0xff]  }
 0x370   : > { %3506 = vmatprep.subr.bf16.mxu1 %v5168_v0 }
 0x372   : > { %3466 = vmatpush1.bf16.msra.mxu0 %v5163_v3  ;;  %v5241_v3 = vld [vmem:[#allocation6 + $0x50] ss:$8 sps:$4 sm:$0xff]  }
 0x373   : > { %3507 = vmatpush1.bf16.msra.mxu1 %v5166_v53  ;;  %3467 = vmatprep.subr.bf16.mxu0 %v5171_v5  ;;  %v5246_v5 = vld [vmem:[#allocation6 + $0x44] ss:$8 sps:$4 sm:$0xff]  }
 0x374   : > { %3508 = vmatprep.subr.bf16.mxu1 %v5174_v6  ;;  %v5283_v6 = vld [vmem:[#allocation6 + $0x170] ss:$8 sps:$4 sm:$0xff]  }
 0x376   : > { %3468 = vmatpush1.bf16.msra.mxu0 %v5169_v60  ;;  %v5285_v60 = vld [vmem:[#allocation6 + $0x174] ss:$8 sps:$4 sm:$0xff]  }
 0x377   : > { %3509 = vmatpush1.bf16.msra.mxu1 %v5172_v7  ;;  %3469 = vmatprep.subr.bf16.mxu0 %v5177_v8  ;;  %v5288_v7 = vld [vmem:[#allocation6 + $0x164] ss:$8 sps:$4 sm:$0xff]   ;;  %v5249_v8 = vld [vmem:[#allocation6 + $0x34] ss:$8 sps:$4 sm:$0xff]  }
 0x378   : > { %3510 = vmatprep.subr.bf16.mxu1 %v5180_v11  ;;  %v5286_v11 = vld [vmem:[#allocation6 + $0x160] ss:$8 sps:$4 sm:$0xff]  }
 0x37a   : > { %3470 = vmatpush1.bf16.msra.mxu0 %v5175_v12  ;;  %v5291_v12 = vld [vmem:[#allocation6 + $0x154] ss:$8 sps:$4 sm:$0xff]  }
 0x37b   : > { %3511 = vmatpush1.bf16.msra.mxu1 %v5178_v9  ;;  %3471 = vmatprep.subr.bf16.mxu0 %v5183_v14  ;;  %v5247_v9 = vld [vmem:[#allocation6 + $0x30] ss:$8 sps:$4 sm:$0xff]   ;;  %v5252_v14 = vld [vmem:[#allocation6 + $0x24] ss:$8 sps:$4 sm:$0xff]  }
 0x37c   : > { %3512 = vmatprep.subr.bf16.mxu1 %v5186_v15  ;;  %v5289_v15 = vld [vmem:[#allocation6 + $0x150] ss:$8 sps:$4 sm:$0xff]  }
 0x37e   : > { %3472 = vmatpush1.bf16.msra.mxu0 %v5181_v19  ;;  %v5294_v19 = vld [vmem:[#allocation6 + $0x144] ss:$8 sps:$4 sm:$0xff]  }
 0x37f   : > { %3513 = vmatpush1.bf16.msra.mxu1 %v5184_v23  ;;  %3473 = vmatprep.subr.bf16.mxu0 %v5189_v26  ;;  %v5250_v23 = vld [vmem:[#allocation6 + $0x20] ss:$8 sps:$4 sm:$0xff]   ;;  %v5255_v26 = vld [vmem:[#allocation6 + $0x14] ss:$8 sps:$4 sm:$0xff]  }
 0x380   : > { %3514 = vmatprep.subr.bf16.mxu1 %v5192_v27  ;;  %v5292_v27 = vld [vmem:[#allocation6 + $0x140] ss:$8 sps:$4 sm:$0xff]  }
 0x382   : > { %3474 = vmatpush2.bf16.msra.mxu0 %v5187_v35  ;;  %v5297_v35 = vld [vmem:[#allocation6 + $0x134] ss:$8 sps:$4 sm:$0xff]  }
 0x383   : > { %3515 = vmatpush2.bf16.msra.mxu1 %v5190_v36  ;;  %3475 = vmatprep.subr.bf16.mxu0 %v5195_v30  ;;  %v5253_v36 = vld [vmem:[#allocation6 + $0x10] ss:$8 sps:$4 sm:$0xff]   ;;  %v5258_v30 = vld [vmem:[#allocation6 + $0x4] ss:$8 sps:$4 sm:$0xff]  }
 0x384   : > { %3516 = vmatprep.subr.bf16.mxu1 %v5198_v25  ;;  %v5295_v25 = vld [vmem:[#allocation6 + $0x130] ss:$8 sps:$4 sm:$0xff]  }
 0x386   : > { %3476 = vmatpush2.bf16.msra.mxu0 %v5193_v47  ;;  %v5300_v47 = vld [vmem:[#allocation6 + $0x124] ss:$8 sps:$4 sm:$0xff]  }
 0x387   : > { %3517 = vmatpush2.bf16.msra.mxu1 %v5196_v34  ;;  %3477 = vmatprep.subr.bf16.mxu0 %v5201_v20  ;;  %v5256_v34 = vld [vmem:[#allocation6] ss:$8 sps:$4 sm:$0xff]   ;;  %v5261_v20 = vld [vmem:[#allocation6 + $0xf4] ss:$8 sps:$4 sm:$0xff]  }
 0x388   : > { %3518 = vmatprep.subr.bf16.mxu1 %v5204_v37  ;;  %v5298_v37 = vld [vmem:[#allocation6 + $0x120] ss:$8 sps:$4 sm:$0xff]  }
 0x38a   : > { %3478 = vmatpush2.bf16.msra.mxu0 %v5199_v41  ;;  %v5303_v41 = vld [vmem:[#allocation6 + $0x114] ss:$8 sps:$4 sm:$0xff]  }
 0x38b   : > { %3519 = vmatpush2.bf16.msra.mxu1 %v5202_v59  ;;  %3479 = vmatprep.subr.bf16.mxu0 %v5207_v1  ;;  %v5259_v59 = vld [vmem:[#allocation6 + $0xf0] ss:$8 sps:$4 sm:$0xff]   ;;  %v5264_v1 = vld [vmem:[#allocation6 + $0xe4] ss:$8 sps:$4 sm:$0xff]  }
 0x38c   : > { %3520 = vmatprep.subr.bf16.mxu1 %v5210_v38  ;;  %v5301_v38 = vld [vmem:[#allocation6 + $0x110] ss:$8 sps:$4 sm:$0xff]  }
 0x38e   : > { %3480 = vmatpush2.bf16.msra.mxu0 %v5205_v28  ;;  %v5306_v28 = vld [vmem:[#allocation6 + $0x104] ss:$8 sps:$4 sm:$0xff]  }
 0x38f   : > { %3521 = vmatpush2.bf16.msra.mxu1 %v5208_v39  ;;  %3481 = vmatprep.subr.bf16.mxu0 %v5213_v40  ;;  %v5262_v39 = vld [vmem:[#allocation6 + $0xe0] ss:$8 sps:$4 sm:$0xff]   ;;  %v5267_v40 = vld [vmem:[#allocation6 + $0xd4] ss:$8 sps:$4 sm:$0xff]  }
 0x390   : > { %3522 = vmatprep.subr.bf16.mxu1 %v5216_v32  ;;  %v5304_v32 = vld [vmem:[#allocation6 + $0x100] ss:$8 sps:$4 sm:$0xff]  }
 0x392   : > { %3482 = vmatpush2.bf16.msra.mxu0 %v5211_v43  ;;  %v5309_v43 = vld [vmem:[#allocation6 + $0x1f4] ss:$8 sps:$4 sm:$0xff]  }
 0x393   : > { %3523 = vmatpush2.bf16.msra.mxu1 %v5214_v31  ;;  %3483 = vmatprep.subr.bf16.mxu0 %v5219_v61  ;;  %v5265_v31 = vld [vmem:[#allocation6 + $0xd0] ss:$8 sps:$4 sm:$0xff]   ;;  %v5270_v61 = vld [vmem:[#allocation6 + $0xc4] ss:$8 sps:$4 sm:$0xff]  }
 0x394   : > { %3524 = vmatprep.subr.bf16.mxu1 %v5222_v24  ;;  %v5307_v24 = vld [vmem:[#allocation6 + $0x1f0] ss:$8 sps:$4 sm:$0xff]  }
 0x396   : > { %3484 = vmatpush2.bf16.msra.mxu0 %v5217_v18  ;;  %v5312_v18 = vld [vmem:[#allocation6 + $0x1e4] ss:$8 sps:$4 sm:$0xff]  }
 0x397   : > { %3525 = vmatpush2.bf16.msra.mxu1 %v5220_v44  ;;  %3485 = vmatprep.subr.bf16.mxu0 %v5225_v33  ;;  %v5268_v44 = vld [vmem:[#allocation6 + $0xc0] ss:$8 sps:$4 sm:$0xff]   ;;  %v5273_v33 = vld [vmem:[#allocation6 + $0xb4] ss:$8 sps:$4 sm:$0xff]  }
 0x398   : > { %3526 = vmatprep.subr.bf16.mxu1 %v5228_v45  ;;  %v5310_v45 = vld [vmem:[#allocation6 + $0x1e0] ss:$8 sps:$4 sm:$0xff]  }
 0x39a   : > { %3486 = vmatpush2.bf16.msra.mxu0 %v5223_v46  ;;  %v5315_v46 = vld [vmem:[#allocation6 + $0x1d4] ss:$8 sps:$4 sm:$0xff]  }
 0x39b   : > { %3527 = vmatpush2.bf16.msra.mxu1 %v5226_v50  ;;  %3487 = vmatprep.subr.bf16.mxu0 %v5231_v51  ;;  %v5271_v50 = vld [vmem:[#allocation6 + $0xb0] ss:$8 sps:$4 sm:$0xff]   ;;  %v5276_v51 = vld [vmem:[#allocation6 + $0xa4] ss:$8 sps:$4 sm:$0xff]  }
 0x39c   : > { %3528 = vmatprep.subr.bf16.mxu1 %v5234_v56  ;;  %v5313_v56 = vld [vmem:[#allocation6 + $0x1d0] ss:$8 sps:$4 sm:$0xff]  }
 0x39e   : > { %3488 = vmatpush2.bf16.msra.mxu0 %v5229_v48  ;;  %v5318_v48 = vld [vmem:[#allocation6 + $0x1c4] ss:$8 sps:$4 sm:$0xff]  }
 0x39f   : > { %3529 = vmatpush2.bf16.msra.mxu1 %v5232_v57  ;;  %3943 = vmatprep.subr.bf16.mxu0 %v5237_v49  ;;  %v5274_v57 = vld [vmem:[#allocation6 + $0xa0] ss:$8 sps:$4 sm:$0xff]   ;;  %v5279_v49 = vld [vmem:[#allocation6 + $0x94] ss:$8 sps:$4 sm:$0xff]  }
 0x3a0   : > { %3984 = vmatprep.subr.bf16.mxu1 %v5285_v60 }
 0x3a1   : > { %3490 = vmatmul.mubr.bf16.vlgmr.msra.gmra.mxu0 %v5903_v29  ;;  %v5916_v55 = vpop.f32.mrf.mxu0  ;;  %v5918_v2 = vpop.f32.mrf.mxu1 }
 0x3a2   : > { %3531 = vmatmul.mubr.bf16.vlgmr.msra.gmra.mxu1 %v5905_v42  ;;  %3944 = vmatpush1.bf16.msra.mxu0 %v5235_v52  ;;  %v5244_v42 = vld [vmem:[#allocation6 + $0x40] ss:$8 sps:$4 sm:$0xff]  }
 0x3a3   : > { %v5921_v4 = vpop.f32.mrf.mxu0  ;;  %v5923_v62 = vpop.f32.mrf.mxu1  ;;  %3945 = vmatprep.subr.bf16.mxu0 %v5240_v54  ;;  %3985 = vmatpush1.bf16.msra.mxu1 %v5283_v6  ;;  %v5316_v52 = vld [vmem:[#allocation6 + $0x1c0] ss:$8 sps:$4 sm:$0xff]   ;;  %v5321_v54 = vld [vmem:[#allocation6 + $0x1b4] ss:$8 sps:$4 sm:$0xff]  }
 0x3a4   : > { %3986 = vmatprep.subr.bf16.mxu1 %v5288_v7 }
 0x3a5   : > { %v3249_v63 = vpop.f32.mrf.mxu0  ;;  %v3290_v0 = vpop.f32.mrf.mxu1 }
 0x3a6   : > { %3946 = vmatpush1.bf16.msra.mxu0 %v5238_v58  ;;  %v5928_v58 = vld [vmem:[%s5967_s8] sm:$0xf]  ;;  %v5282_v63 = vld [vmem:[#allocation6 + $0x84] ss:$8 sps:$4 sm:$0xff]  }
 0x3a7   : > { %v3250_v53 = vpop.f32.mrf.mxu0  ;;  %v3291_v29 = vpop.f32.mrf.mxu1  ;;  %3947 = vmatprep.subr.bf16.mxu0 %v5243_v10  ;;  %3987 = vmatpush1.bf16.msra.mxu1 %v5286_v11  ;;  %v5277_v10 = vld [vmem:[#allocation6 + $0x90] ss:$8 sps:$4 sm:$0xff]  }
 0x3a8   : > { %3988 = vmatprep.subr.bf16.mxu1 %v5291_v12  ;;  %v5319_v0 = vld [vmem:[#allocation6 + $0x1b0] ss:$8 sps:$4 sm:$0xff]   ;;  %v3198_v53 = vrot.slane %v5928_v58, %v5736_v21  ;;  %v5280_v29 = vld [vmem:[#allocation6 + $0x80] ss:$8 sps:$4 sm:$0xff]  }
 0x3aa   : > { %3948 = vmatpush1.bf16.msra.mxu0 %v5241_v3  ;;  %v3194_v3 = vrot.slane %v5928_v58, %v5727_v16  ;;  %v3248_v6 = vadd.f32 %v5921_v4, %v3198_v53 }
 0x3ab   : > { %3949 = vmatprep.subr.bf16.mxu0 %v5246_v5  ;;  %3989 = vmatpush1.bf16.msra.mxu1 %v5289_v15 }
 0x3ac   : > { %3990 = vmatprep.subr.bf16.mxu1 %v5294_v19  ;;  %v3246_v5 = vadd.f32 %v5916_v55, %v3194_v3  ;;  %v3289_v11 = vadd.f32 %v5923_v62, %v3248_v6  ;;  %v5330_v62 = vld [vmem:[#allocation6 + $0x184] ss:$8 sps:$4 sm:$0xff]  }
 0x3ae   : > { %3950 = vmatpush1.bf16.msra.mxu0 %v5244_v42  ;;  %v3287_v60 = vadd.f32 %v5918_v2, %v3246_v5 }
 0x3af   : > { %3951 = vmatprep.subr.bf16.mxu0 %v5249_v8  ;;  %3991 = vmatpush1.bf16.msra.mxu1 %v5292_v27  ;;  %v5324_v8 = vld [vmem:[#allocation6 + $0x1a4] ss:$8 sps:$4 sm:$0xff]   ;;  %v5327_v27 = vld [vmem:[#allocation6 + $0x194] ss:$8 sps:$4 sm:$0xff]  }
 0x3b0   : > { %3992 = vmatprep.subr.bf16.mxu1 %v5297_v35  ;;  %v5325_v35 = vld [vmem:[#allocation6 + $0x190] ss:$8 sps:$4 sm:$0xff]  }
 0x3b2   : > { %3952 = vmatpush1.bf16.msra.mxu0 %v5247_v9  ;;  %v5322_v9 = vld [vmem:[#allocation6 + $0x1a0] ss:$8 sps:$4 sm:$0xff]  }
 0x3b3   : > { %3953 = vmatprep.subr.bf16.mxu0 %v5252_v14  ;;  %3993 = vmatpush1.bf16.msra.mxu1 %v5295_v25 }
 0x3b4   : > { %3994 = vmatprep.subr.bf16.mxu1 %v5300_v47 }
 0x3b6   : > { %3954 = vmatpush1.bf16.msra.mxu0 %v5250_v23 }
 0x3b7   : > { %3955 = vmatprep.subr.bf16.mxu0 %v5255_v26  ;;  %3995 = vmatpush1.bf16.msra.mxu1 %v5298_v37 }
 0x3b8   : > { %3996 = vmatprep.subr.bf16.mxu1 %v5303_v41 }
 0x3ba   : > { %3956 = vmatpush1.bf16.msra.mxu0 %v5253_v36 }
 0x3bb   : > { %3957 = vmatprep.subr.bf16.mxu0 %v5258_v30  ;;  %3997 = vmatpush1.bf16.msra.mxu1 %v5301_v38 }
 0x3bc   : > { %3998 = vmatprep.subr.bf16.mxu1 %v5306_v28 }
 0x3be   : > { %3958 = vmatpush1.bf16.msra.mxu0 %v5256_v34  ;;  %v5328_v34 = vld [vmem:[#allocation6 + $0x180] ss:$8 sps:$4 sm:$0xff]  }
 0x3bf   : > { %3959 = vmatprep.subr.bf16.mxu0 %v5261_v20  ;;  %3999 = vmatpush1.bf16.msra.mxu1 %v5304_v32  ;;  %v5331_v32 = vld [vmem:[#allocation7 + $0x78] sm:$0xff]  }
 0x3c0   : > { %4000 = vmatprep.subr.bf16.mxu1 %v5309_v43  ;;  %v5332_v43 = vld [vmem:[#allocation7 + $0x38] sm:$0xff]  }
 0x3c2   : > { %3960 = vmatpush2.bf16.msra.mxu0 %v5259_v59 }
 0x3c3   : > { %3961 = vmatprep.subr.bf16.mxu0 %v5264_v1  ;;  %4001 = vmatpush2.bf16.msra.mxu1 %v5307_v24  ;;  %v5335_v24 = vld [vmem:[#allocation7 + $0x68] sm:$0xff]  }
 0x3c4   : > { %4002 = vmatprep.subr.bf16.mxu1 %v5312_v18  ;;  %v5336_v18 = vld [vmem:[#allocation7 + $0x28] sm:$0xff]  }
 0x3c6   : > { %3962 = vmatpush2.bf16.msra.mxu0 %v5262_v39 }
 0x3c7   : > { %3963 = vmatprep.subr.bf16.mxu0 %v5267_v40  ;;  %4003 = vmatpush2.bf16.msra.mxu1 %v5310_v45  ;;  %v5339_v45 = vld [vmem:[#allocation7 + $0x58] sm:$0xff]  }
 0x3c8   : > { %4004 = vmatprep.subr.bf16.mxu1 %v5315_v46  ;;  %v5340_v46 = vld [vmem:[#allocation7 + $0x18] sm:$0xff]  }
 0x3ca   : > { %3964 = vmatpush2.bf16.msra.mxu0 %v5265_v31  ;;  %v5333_v31 = vld [vmem:[#allocation7 + $0x70] sm:$0xff]  }
 0x3cb   : > { %3965 = vmatprep.subr.bf16.mxu0 %v5270_v61  ;;  %4005 = vmatpush2.bf16.msra.mxu1 %v5313_v56  ;;  %v5334_v61 = vld [vmem:[#allocation7 + $0x30] sm:$0xff]   ;;  %v3202_v56 = vrot.slane %v5928_v58, %v835_v17 }
 0x3cc   : > { %4006 = vmatprep.subr.bf16.mxu1 %v5318_v48  ;;  %v3206_v48 = vrot.slane %v5928_v58, %v839_v22 }
 0x3ce   : > { %3966 = vmatpush2.bf16.msra.mxu0 %v5268_v44  ;;  %v5337_v44 = vld [vmem:[#allocation7 + $0x60] sm:$0xff]  }
 0x3cf   : > { %3967 = vmatprep.subr.bf16.mxu0 %v5273_v33  ;;  %4007 = vmatpush2.bf16.msra.mxu1 %v5316_v52  ;;  %v5338_v33 = vld [vmem:[#allocation7 + $0x20] sm:$0xff]  }
 0x3d0   : > { %4008 = vmatprep.subr.bf16.mxu1 %v5321_v54 }
 0x3d2   : > { %3968 = vmatpush2.bf16.msra.mxu0 %v5271_v50  ;;  %v5341_v50 = vld [vmem:[#allocation7 + $0x50] sm:$0xff]  }
 0x3d3   : > { %3969 = vmatprep.subr.bf16.mxu0 %v5276_v51  ;;  %4009 = vmatpush2.bf16.msra.mxu1 %v5319_v0  ;;  %v5342_v51 = vld [vmem:[#allocation7 + $0x10] sm:$0xff]  }
 0x3d4   : > { %4010 = vmatprep.subr.bf16.mxu1 %v5324_v8 }
 0x3d6   : > { %3970 = vmatpush2.bf16.msra.mxu0 %v5274_v57 }
 0x3d7   : > { %3971 = vmatprep.subr.bf16.mxu0 %v5279_v49  ;;  %4011 = vmatpush2.bf16.msra.mxu1 %v5322_v9  ;;  %v5343_v9 = vld [vmem:[#allocation7 + $0x48] sm:$0xff]  }
 0x3d8   : > { %4012 = vmatprep.subr.bf16.mxu1 %v5327_v27 }
 0x3da   : > { %3972 = vmatpush2.bf16.msra.mxu0 %v5277_v10 }
 0x3db   : > { %3973 = vmatprep.subr.bf16.mxu0 %v5282_v63  ;;  %4013 = vmatpush2.bf16.msra.mxu1 %v5325_v35 }
 0x3dc   : > { %4014 = vmatprep.subr.bf16.mxu1 %v5330_v62 }
 0x3de   : > { %3974 = vmatpush2.bf16.msra.mxu0 %v5280_v29 }
 0x3df   : > { %4015 = vmatpush2.bf16.msra.mxu1 %v5328_v34  ;;  %4736 = vmatprep.subr.bf16.mxu0 %v5331_v32 }
 0x3e1   : > { %v3327_v7 = vpop.f32.mrf.mxu0  ;;  %v3368_v42 = vpop.f32.mrf.mxu1 }
 0x3e2   : > { %v3328_v12 = vadd.f32 %v3327_v7, %v3287_v60 }
 0x3e3   : > { %v3329_v14 = vpop.f32.mrf.mxu0  ;;  %v3370_v15 = vpop.f32.mrf.mxu1 }
 0x3e4   : > { %v3369_v19 = vadd.f32 %v3368_v42, %v3328_v12  ;;  %v3330_v23 = vadd.f32 %v3329_v14, %v3289_v11  ;;  %v5344_v14 = vld [vmem:[#allocation7 + $0x8] sm:$0xff]  }
 0x3e5   : > { %v3331_v26 = vpop.f32.mrf.mxu0  ;;  %v3372_v55 = vpop.f32.mrf.mxu1 }
 0x3e6   : > { %v3371_v4 = vadd.f32 %v3370_v15, %v3330_v23  ;;  %v3539_v36 = vmax.f32 %v3369_v19, 0.0  ;;  %v5345_v23 = vld [vmem:[#allocation7 + $0x40] sm:$0xff]   ;;  %v3611_v55 = vld [vmem:[%s5969_s10] sm:$0x3] }
 0x3e7   : > { %v3332_v2 = vpop.f32.mrf.mxu0  ;;  %v3373_v30 = vpop.f32.mrf.mxu1  ;;  %v5346_v26 = vld [vmem:[#allocation7] sm:$0xff]   ;;  %v3936_v27 = vrot.slane %v3611_v55, %v5727_v16  ;;  %v4061_v16 = vld [vmem:[%s5971_s12] sm:$0x1] }
 0x3e8   : > { %v3540_v25 = vmax.f32 %v3371_v4, 0.0  ;;  %v3543_v20 = vpack.c.bf16 %v3539_v36, %v3539_v36  ;;  %v3940_v4 = vrot.slane %v3611_v55, %v5736_v21 }
 0x3ea   : > { %v3544_v47 = vpack.c.bf16 %v3540_v25, %v3540_v25 }
 0x3ec   : > { %3975 = vmatprep.mubr.bf16.mxu0 %v3544_v47 }
 0x3ed   : > { %3976 = vmatmul.mubr.bf16.vlgmr.msra.gmra.mxu0 %v3543_v20 }
 0x3ee   : > { %4737 = vmatpush3.bf16.msra.mxu0 %v5332_v43 }
 0x3ef   : > { %4738 = vmatprep.subr.bf16.mxu0 %v5333_v31 }
 0x3f2   : > { %4739 = vmatpush3.bf16.msra.mxu0 %v5334_v61 }
 0x3f3   : > { %4740 = vmatprep.subr.bf16.mxu0 %v5335_v24 }
 0x3f6   : > { %4741 = vmatpush3.bf16.msra.mxu0 %v5336_v18 }
 0x3f7   : > { %4742 = vmatprep.subr.bf16.mxu0 %v5337_v44 }
 0x3fa   : > { %4743 = vmatpush3.bf16.msra.mxu0 %v5338_v33 }
 0x3fb   : > { %4744 = vmatprep.subr.bf16.mxu0 %v5339_v45 }
 0x3fe   : > { %4745 = vmatpush3.bf16.msra.mxu0 %v5340_v46 }
 0x3ff   : > { %4746 = vmatprep.subr.bf16.mxu0 %v5341_v50 }
 0x402   : > { %4747 = vmatpush3.bf16.msra.mxu0 %v5342_v51 }
 0x403   : > { %4748 = vmatprep.subr.bf16.mxu0 %v5343_v9 }
 0x406   : > { %4749 = vmatpush3.bf16.msra.mxu0 %v5344_v14 }
 0x407   : > { %4750 = vmatprep.subr.bf16.mxu0 %v5345_v23 }
 0x40a   : > { %4751 = vmatpush3.bf16.msra.mxu0 %v5346_v26 }
 0x421   : > { %v3409_v37 = vpop.f32.mrf.mxu0 }
 0x422   : > { %v3450_v41 = vpop.f32.mrf.mxu1  ;;  %v3410_v57 = vadd.f32 %v3409_v37, %v3202_v56 }
 0x423   : > { %v3411_v59 = vpop.f32.mrf.mxu0 }
 0x424   : > { %v3452_v1 = vpop.f32.mrf.mxu1  ;;  %v3412_v49 = vadd.f32 %v3411_v59, %v3206_v48  ;;  %v3451_v52 = vadd.f32 %v3450_v41, %v3410_v57 }
 0x425   : > { %v3413_v38 = vpop.f32.mrf.mxu0 }
 0x426   : > { %v3454_v28 = vpop.f32.mrf.mxu1  ;;  %v3453_v10 = vadd.f32 %v3452_v1, %v3412_v49 }
 0x427   : > { %v3414_v39 = vpop.f32.mrf.mxu0 }
 0x428   : > { %v3455_v40 = vpop.f32.mrf.mxu1 }
 0x461   : > { %v3491_v54 = vpop.f32.mrf.mxu0 }
 0x462   : > { %v3492_v63 = vadd.f32 %v3491_v54, %v3451_v52  ;;  %v3532_v0 = vpop.f32.mrf.mxu1 }
 0x463   : > { %v3493_v3 = vpop.f32.mrf.mxu0 }
 0x464   : > { %v3533_v53 = vadd.f32 %v3532_v0, %v3492_v63  ;;  %v3494_v29 = vadd.f32 %v3493_v3, %v3453_v10  ;;  %v3534_v5 = vpop.f32.mrf.mxu1 }
 0x465   : > { %v3495_v6 = vpop.f32.mrf.mxu0 }
 0x466   : > { %v3535_v60 = vadd.f32 %v3534_v5, %v3494_v29  ;;  %v3536_v7 = vpop.f32.mrf.mxu1  ;;  %v3541_v42 = vmax.f32 %v3533_v53, 0.0 }
 0x467   : > { %v3496_v17 = vpop.f32.mrf.mxu0 }
 0x468   : > { %v3542_v8 = vmax.f32 %v3535_v60, 0.0  ;;  %v3537_v13 = vpop.f32.mrf.mxu1  ;;  %v3545_v22 = vpack.c.bf16 %v3541_v42, %v3541_v42 }
 0x46a   : > { %v3546_v11 = vpack.c.bf16 %v3542_v8, %v3542_v8 }
 0x46c   : > { %4016 = vmatprep.mubr.bf16.mxu1 %v3546_v11 }
 0x46d   : > { %4017 = vmatmul.mubr.bf16.vlgmr.msra.gmra.mxu1 %v3545_v22 }
 0x4ad   : > { %v3977_v58 = vpop.f32.mrf.mxu0 }
 0x4ae   : > { %v3978_v35 = vadd.f32 %v3977_v58, %v3936_v27 }
 0x4af   : > { %v3979_v12 = vpop.f32.mrf.mxu0 }
 0x4b0   : > { %v3980_v2 = vadd.f32 %v3979_v12, %v3940_v4 }
 0x4b1   : > { %v3981_v15 = vpop.f32.mrf.mxu0 }
 0x4b3   : > { %v3982_v19 = vpop.f32.mrf.mxu0 }
 0x52d   : > { %v4018_v36 = vpop.f32.mrf.mxu1 }
 0x52e   : > { %v4019_v30 = vadd.f32 %v4018_v36, %v3978_v35 }
 0x52f   : > { %v4020_v25 = vpop.f32.mrf.mxu1 }
 0x530   : > { %v4021_v62 = vadd.f32 %v4020_v25, %v3980_v2  ;;  %v4025_v47 = vmax.f32 %v4019_v30, 0.0 }
 0x531   : > { %v4022_v34 = vpop.f32.mrf.mxu1 }
 0x532   : > { %v4026_v20 = vmax.f32 %v4021_v62, 0.0  ;;  %v4027_v59 = vpack.c.bf16 %v4025_v47, %v4025_v47 }
 0x533   : > { %v4023_v37 = vpop.f32.mrf.mxu1 }
 0x534   : > { %v4028_v41 = vpack.c.bf16 %v4026_v20, %v4026_v20 }
 0x536   : > { %4190 = vmatprep.mubr.bf16.mxu0 %v4028_v41 }
 0x537   : > { %4191 = vmatmul.mubr.bf16.vlgmr.msra.gmra.mxu0 %v4027_v59 }
 0x5f7   : > { %v4752_v1 = vpop.f32.mrf.mxu0 }
 0x5f9   : > { %v4753_v21 = vpop.f32.mrf.mxu0 }
 0x5fa   : > { %v4754_v38 = vadd.f32 %v4753_v21, %v4752_v1 }
 0x5fb   : > { %v4755_v28 = vpop.f32.mrf.mxu0 }
 0x5fc   : > { %v4193_v39 = vadd.f32 %v4754_v38, %v4061_v16 }
 0x5fd   : > { %v4756_v40 = vpop.f32.mrf.mxu0 }
 0x5fe   : > { %4198 = vst [vmem:[%s495_s27] sm:$0x1] %v4193_v39 }
 0x5ff PF: > { %s26_s25 = sadd.s32 1, %s5469_s25  }
 0x600   : > { %p23_p2 = scmp.ge.s32.totalorder %s26_s25, 4  }
 0x602   :  { %25 = sbr.rel (!%p23_p2) target bundleno = 3 (0x3), region = 119 }
 0x607   :  { %4216 = vsyncpa [#allocation3], 1 }
 0x608   :  { %4218 = vsyncpa [#allocation3 + $0x1], 1 }
 0x609   :  { %4219 = vsyncpa [#allocation5], 1 }
 0x60a   :  { %4220 = vsyncpa [#allocation8], 1 }

</bundles_post_ra>
